<compile_context>
chip_gen: v7x
topology: tpu7x:2x2x1
jax: 0.10.0
libtpu: 0.0.40
codegen_flags: <defaults>
</compile_context>

<pallas_src>
import jax
import jax.numpy as jnp
from jax.experimental import pallas as pl
from jax.experimental.pallas import tpu as pltpu


# ----------------------------------------------------------------------------
# Fused Pallas kernel (one grid step == one sample)
# ----------------------------------------------------------------------------
def _cnn2_fused_kernel(x_ref, m1_ref, b1_ref, m2e_ref, m2o_ref, b2_ref,
                       wfc1_ref, bfc1_ref, wfc2_ref, bfc2_ref, o_ref):
    x = x_ref[0]                                     # (16, 10) f32  (Cin == 1)

    # conv1 + ReLU -> a1: (14, 128), columns = w*16 + c_out, w in [0,8).
    a1 = (jnp.dot(x[0:14, :], m1_ref[0], preferred_element_type=jnp.float32)
          + jnp.dot(x[1:15, :], m1_ref[1], preferred_element_type=jnp.float32)
          + jnp.dot(x[2:16, :], m1_ref[2], preferred_element_type=jnp.float32)
          + b1_ref[...])
    a1 = jnp.maximum(a1, 0.0)

    # conv2, even / odd output columns -> (12, 96) each, columns = wp*32 + c_out.
    ze = (jnp.dot(a1[0:12, :], m2e_ref[0], preferred_element_type=jnp.float32)
          + jnp.dot(a1[1:13, :], m2e_ref[1], preferred_element_type=jnp.float32)
          + jnp.dot(a1[2:14, :], m2e_ref[2], preferred_element_type=jnp.float32)
          + b2_ref[...])
    zo = (jnp.dot(a1[0:12, :], m2o_ref[0], preferred_element_type=jnp.float32)
          + jnp.dot(a1[1:13, :], m2o_ref[1], preferred_element_type=jnp.float32)
          + jnp.dot(a1[2:14, :], m2o_ref[2], preferred_element_type=jnp.float32)
          + b2_ref[...])
    # ReLU + horizontal half of the 2x2 max-pool (ReLU and max commute).
    cp = jnp.maximum(jnp.maximum(ze, zo), 0.0)       # (12, 96)

    # Vertical half of the pool + flatten + fc1, fused over pooled rows hp.
    h = bfc1_ref[...]                                # (1, 128)
    for hp in range(6):
        pooled = jnp.maximum(cp[2 * hp:2 * hp + 1, :],
                             cp[2 * hp + 1:2 * hp + 2, :])          # (1, 96)
        h = h + jnp.dot(pooled, wfc1_ref[96 * hp:96 * (hp + 1), :],
                        preferred_element_type=jnp.float32)
    h = jnp.maximum(h, 0.0)                          # fc1 ReLU

    # fc2 + log_softmax.
    z = (jnp.dot(h, wfc2_ref[...], preferred_element_type=jnp.float32)
         + bfc2_ref[...])                            # (1, 10)
    m = jnp.max(z, axis=-1, keepdims=True)
    o_ref[0] = z - (m + jnp.log(jnp.sum(jnp.exp(z - m), axis=-1, keepdims=True)))


# ----------------------------------------------------------------------------
# One-time host-side weight repack into the fused-kernel layout
# ----------------------------------------------------------------------------
def _prepare_weights(params):
    f32 = jnp.float32
    w1 = params["w1"].astype(f32)      # (3, 3, 1, 16)
    b1 = params["b1"].astype(f32)      # (16,)
    w2 = params["w2"].astype(f32)      # (3, 3, 16, 32)
    b2 = params["b2"].astype(f32)      # (32,)
    wfc1 = params["wfc1"].astype(f32)  # (576, 128), rows = c*18 + hp*3 + wp
    bfc1 = params["bfc1"].astype(f32)  # (128,)
    wfc2 = params["wfc2"].astype(f32)  # (128, 10)
    bfc2 = params["bfc2"].astype(f32)  # (10,)

    # conv1 band matrices M1[dy]: (10, 8*16); rows = input w, cols = out_w*16 + c.
    m1 = jnp.stack([
        jnp.concatenate([jnp.pad(w1[dy, :, 0, :], ((w, 7 - w), (0, 0)))
                         for w in range(8)], axis=1)
        for dy in range(3)])                                    # (3, 10, 128)

    # conv2 band matrices split by output-w parity:
    # M2?[dy]: (8*16, 3*32); rows = in_w*16 + c_in, cols = wp*32 + c_out.
    def band2(dy, parity):
        blk = w2[dy].reshape(48, 32)                            # rows = dx*16 + c_in
        cols = []
        for wp in range(3):
            w = 2 * wp + parity
            cols.append(jnp.pad(blk, ((16 * w, 128 - 48 - 16 * w), (0, 0))))
        return jnp.concatenate(cols, axis=1)                    # (128, 96)

    m2e = jnp.stack([band2(dy, 0) for dy in range(3)])          # (3, 128, 96)
    m2o = jnp.stack([band2(dy, 1) for dy in range(3)])          # (3, 128, 96)

    b1row = jnp.tile(b1, 8).reshape(1, 128)
    b2row = jnp.tile(b2, 3).reshape(1, 96)

    # fc1: permute input-feature rows from torch-NCHW-flatten order (c, hp, wp)
    # to the kernel's pooled order (hp, wp, c).
    wfc1p = jnp.transpose(wfc1.reshape(32, 6, 3, 128), (1, 2, 0, 3)).reshape(576, 128)

    return (m1, b1row, m2e, m2o, b2row,
            wfc1p, bfc1.reshape(1, 128), wfc2, bfc2.reshape(1, 10))


# ----------------------------------------------------------------------------
# CNN2 forward (single fused pallas_call, batch on a parallel grid axis)
# ----------------------------------------------------------------------------
def cnn2_forward(x_nchw, params):
    N, Cin, H, W = x_nchw.shape
    assert (Cin, H, W) == (1, 16, 10), "fc1=Linear(576,128) fixes input to (N,1,16,10)"
    x = x_nchw[:, 0, :, :].astype(jnp.float32)       # (N, 16, 10)
    weights = _prepare_weights(params)

    wspec = pl.BlockSpec(memory_space=pltpu.MemorySpace.VMEM)   # whole array in VMEM
    out = pl.pallas_call(
        _cnn2_fused_kernel,
        out_shape=jax.ShapeDtypeStruct((N, 1, 10), jnp.float32),
        grid=(N,),
        in_specs=[pl.BlockSpec((1, H, W), lambda n: (n, 0, 0))] + [wspec] * 9,
        out_specs=pl.BlockSpec((1, 1, 10), lambda n: (n, 0, 0)),
        compiler_params=pltpu.CompilerParams(dimension_semantics=("parallel",)),
    )(x, *weights)
    return out.reshape(N, 10)


# ----------------------------------------------------------------------------
# Parameter init (PyTorch shapes; conv weights as (kh,kw,Cin,Cout), linear (in,out))
# ----------------------------------------------------------------------------
def init_params(key):
    ks = jax.random.split(key, 10)

    def u(k, shape, fan_in):
        bound = 1.0 / jnp.sqrt(float(fan_in))
        return jax.random.uniform(k, shape, jnp.float32, -bound, bound)

    return {
        "w1": u(ks[0], (3, 3, 1, 16), 9),      # conv1: Conv2d(1, 16, 3, 1)
        "b1": u(ks[1], (16,), 9),
        "w2": u(ks[2], (3, 3, 16, 32), 144),   # conv2: Conv2d(16, 32, 3, 1)
        "b2": u(ks[3], (32,), 144),
        "w3": u(ks[4], (3, 3, 32, 64), 288),   # conv3: declared but unused in forward
        "b3": u(ks[5], (64,), 288),
        "wfc1": u(ks[6], (576, 128), 576),     # fc1: Linear(576, 128)
        "bfc1": u(ks[7], (128,), 576),
        "wfc2": u(ks[8], (128, 10), 128),      # fc2: Linear(128, 10)
        "bfc2": u(ks[9], (10,), 128),
    }


# ----------------------------------------------------------------------------
# Pure-JAX reference (mirrors the PyTorch forward, eval mode)
# ----------------------------------------------------------------------------
def _reference_forward(x_nchw, params):
    x = jnp.transpose(x_nchw, (0, 2, 3, 1)).astype(jnp.float32)   # NHWC

    def conv_relu(x, w, b):
        N, H, W, Cin = x.shape
        kh, kw, _, Cout = w.shape
        Ho, Wo = H - kh + 1, W - kw + 1
        cols = [x[:, dy:dy + Ho, dx:dx + Wo, :] for dy in range(kh) for dx in range(kw)]
        patches = jnp.concatenate(cols, axis=-1).reshape(N * Ho * Wo, kh * kw * Cin)
        y = patches @ w.reshape(kh * kw * Cin, Cout) + b
        return jnp.maximum(y, 0.0).reshape(N, Ho, Wo, Cout)

    x = conv_relu(x, params["w1"], params["b1"])
    x = conv_relu(x, params["w2"], params["b2"])
    N, H, W, C = x.shape
    x = x.reshape(N, H // 2, 2, W // 2, 2, C).max(axis=(2, 4))    # max_pool2d(2)
    flat = jnp.transpose(x, (0, 3, 1, 2)).reshape(N, -1)          # torch.flatten on NCHW
    h = jnp.maximum(flat @ params["wfc1"] + params["bfc1"], 0.0)
    z = h @ params["wfc2"] + params["bfc2"]
    return jax.nn.log_softmax(z, axis=-1)


if __name__ == "__main__":
    key = jax.random.PRNGKey(0)
    pkey, xkey = jax.random.split(key)
    params = init_params(pkey)

    # (2,1,16,10) -> conv1 -> (2,16,14,8) -> conv2 -> (2,32,12,6) -> pool -> (2,32,6,3) -> 576.
    x = jax.random.normal(xkey, (2, 1, 16, 10), dtype=jnp.float32)

    out = jax.jit(cnn2_forward)(x, params)
    out = jax.block_until_ready(out)

    assert out.shape == (2, 10), out.shape
    assert bool(jnp.all(jnp.isfinite(out)))
    # log_softmax rows should exponentiate-sum to 1.
    assert bool(jnp.allclose(jnp.sum(jnp.exp(out), axis=1), 1.0, atol=1e-4))
    # Match the pure-JAX reference of the PyTorch forward.
    ref = _reference_forward(x, params)
    assert bool(jnp.allclose(out, ref, atol=1e-4, rtol=1e-4)), float(jnp.max(jnp.abs(out - ref)))
    print("KERNEL_OK")
</pallas_src>

<mosaic_0001>
module attributes {stable_mosaic.version = 11 : i64} {
  func.func @_cnn2_fused_kernel(%arg0: i32, %arg1: memref<1x16x10xf32, #tpu.memory_space<vmem>>, %arg2: memref<3x10x128xf32, #tpu.memory_space<vmem>>, %arg3: memref<1x128xf32, #tpu.memory_space<vmem>>, %arg4: memref<3x128x96xf32, #tpu.memory_space<vmem>>, %arg5: memref<3x128x96xf32, #tpu.memory_space<vmem>>, %arg6: memref<1x96xf32, #tpu.memory_space<vmem>>, %arg7: memref<576x128xf32, #tpu.memory_space<vmem>>, %arg8: memref<1x128xf32, #tpu.memory_space<vmem>>, %arg9: memref<128x10xf32, #tpu.memory_space<vmem>>, %arg10: memref<1x10xf32, #tpu.memory_space<vmem>>, %arg11: memref<1x1x10xf32, #tpu.memory_space<vmem>>) attributes {dimension_semantics = [#tpu.dimension_semantics<parallel>], iteration_bounds = array<i64: 2>, scalar_prefetch = 0 : i64, scratch_operands = 0 : i64, tpu.core_type = #tpu.core_type<tc>, window_params = [{transform_indices = @transform_0, window_bounds = array<i64: 1, 16, 10>}, {pipeline_mode = #tpu.pipeline_mode<synchronous>, transform_indices = @transform_1, window_bounds = array<i64: 3, 10, 128>}, {pipeline_mode = #tpu.pipeline_mode<synchronous>, transform_indices = @transform_2, window_bounds = array<i64: 1, 128>}, {pipeline_mode = #tpu.pipeline_mode<synchronous>, transform_indices = @transform_3, window_bounds = array<i64: 3, 128, 96>}, {pipeline_mode = #tpu.pipeline_mode<synchronous>, transform_indices = @transform_4, window_bounds = array<i64: 3, 128, 96>}, {pipeline_mode = #tpu.pipeline_mode<synchronous>, transform_indices = @transform_5, window_bounds = array<i64: 1, 96>}, {pipeline_mode = #tpu.pipeline_mode<synchronous>, transform_indices = @transform_6, window_bounds = array<i64: 576, 128>}, {pipeline_mode = #tpu.pipeline_mode<synchronous>, transform_indices = @transform_7, window_bounds = array<i64: 1, 128>}, {pipeline_mode = #tpu.pipeline_mode<synchronous>, transform_indices = @transform_8, window_bounds = array<i64: 128, 10>}, {pipeline_mode = #tpu.pipeline_mode<synchronous>, transform_indices = @transform_9, window_bounds = array<i64: 1, 10>}, {transform_indices = @transform_10, window_bounds = array<i64: 1, 1, 10>}]} {
    %c0 = arith.constant 0 : index
    %c0_0 = arith.constant 0 : index
    %c0_1 = arith.constant 0 : index
    %0 = vector.load %arg1[%c0, %c0_0, %c0_1] : memref<1x16x10xf32, #tpu.memory_space<vmem>>, vector<1x16x10xf32>
    %1 = vector.shape_cast %0 : vector<1x16x10xf32> to vector<16x10xf32>
    %2 = vector.extract_strided_slice %1 {offsets = [0, 0], sizes = [14, 10], strides = [1, 1]} : vector<16x10xf32> to vector<14x10xf32>
    %c0_2 = arith.constant 0 : index
    %c0_3 = arith.constant 0 : index
    %c0_4 = arith.constant 0 : index
    %3 = vector.load %arg2[%c0_2, %c0_3, %c0_4] : memref<3x10x128xf32, #tpu.memory_space<vmem>>, vector<1x10x128xf32>
    %4 = vector.shape_cast %3 : vector<1x10x128xf32> to vector<10x128xf32>
    %cst = arith.constant dense<0.000000e+00> : vector<14x128xf32>
    %5 = tpu.matmul %2, %4, %cst {dimension_numbers = #tpu.dot_dimension_numbers<[1], [0], [0], [1], [0, 0, 1, 1], [], []>} : vector<14x10xf32>, vector<10x128xf32>, vector<14x128xf32> -> vector<14x128xf32>
    %6 = vector.extract_strided_slice %1 {offsets = [1, 0], sizes = [14, 10], strides = [1, 1]} : vector<16x10xf32> to vector<14x10xf32>
    %c1 = arith.constant 1 : index
    %c0_5 = arith.constant 0 : index
    %c0_6 = arith.constant 0 : index
    %7 = vector.load %arg2[%c1, %c0_5, %c0_6] : memref<3x10x128xf32, #tpu.memory_space<vmem>>, vector<1x10x128xf32>
    %8 = vector.shape_cast %7 : vector<1x10x128xf32> to vector<10x128xf32>
    %cst_7 = arith.constant dense<0.000000e+00> : vector<14x128xf32>
    %9 = tpu.matmul %6, %8, %cst_7 {dimension_numbers = #tpu.dot_dimension_numbers<[1], [0], [0], [1], [0, 0, 1, 1], [], []>} : vector<14x10xf32>, vector<10x128xf32>, vector<14x128xf32> -> vector<14x128xf32>
    %10 = arith.addf %5, %9 : vector<14x128xf32>
    %11 = vector.extract_strided_slice %1 {offsets = [2, 0], sizes = [14, 10], strides = [1, 1]} : vector<16x10xf32> to vector<14x10xf32>
    %c2 = arith.constant 2 : index
    %c0_8 = arith.constant 0 : index
    %c0_9 = arith.constant 0 : index
    %12 = vector.load %arg2[%c2, %c0_8, %c0_9] : memref<3x10x128xf32, #tpu.memory_space<vmem>>, vector<1x10x128xf32>
    %13 = vector.shape_cast %12 : vector<1x10x128xf32> to vector<10x128xf32>
    %cst_10 = arith.constant dense<0.000000e+00> : vector<14x128xf32>
    %14 = tpu.matmul %11, %13, %cst_10 {dimension_numbers = #tpu.dot_dimension_numbers<[1], [0], [0], [1], [0, 0, 1, 1], [], []>} : vector<14x10xf32>, vector<10x128xf32>, vector<14x128xf32> -> vector<14x128xf32>
    %15 = arith.addf %10, %14 : vector<14x128xf32>
    %c0_11 = arith.constant 0 : index
    %c0_12 = arith.constant 0 : index
    %16 = vector.load %arg3[%c0_11, %c0_12] : memref<1x128xf32, #tpu.memory_space<vmem>>, vector<1x128xf32>
    %17 = vector.broadcast %16 : vector<1x128xf32> to vector<14x128xf32>
    %18 = arith.addf %15, %17 : vector<14x128xf32>
    %cst_13 = arith.constant 0.000000e+00 : f32
    %19 = vector.broadcast %cst_13 : f32 to vector<14x128xf32>
    %20 = arith.maximumf %18, %19 : vector<14x128xf32>
    %21 = vector.extract_strided_slice %20 {offsets = [0, 0], sizes = [12, 128], strides = [1, 1]} : vector<14x128xf32> to vector<12x128xf32>
    %c0_14 = arith.constant 0 : index
    %c0_15 = arith.constant 0 : index
    %c0_16 = arith.constant 0 : index
    %22 = vector.load %arg4[%c0_14, %c0_15, %c0_16] : memref<3x128x96xf32, #tpu.memory_space<vmem>>, vector<1x128x96xf32>
    %23 = vector.shape_cast %22 : vector<1x128x96xf32> to vector<128x96xf32>
    %cst_17 = arith.constant dense<0.000000e+00> : vector<12x96xf32>
    %24 = tpu.matmul %21, %23, %cst_17 {dimension_numbers = #tpu.dot_dimension_numbers<[1], [0], [0], [1], [0, 0, 1, 1], [], []>} : vector<12x128xf32>, vector<128x96xf32>, vector<12x96xf32> -> vector<12x96xf32>
    %25 = vector.extract_strided_slice %20 {offsets = [1, 0], sizes = [12, 128], strides = [1, 1]} : vector<14x128xf32> to vector<12x128xf32>
    %c1_18 = arith.constant 1 : index
    %c0_19 = arith.constant 0 : index
    %c0_20 = arith.constant 0 : index
    %26 = vector.load %arg4[%c1_18, %c0_19, %c0_20] : memref<3x128x96xf32, #tpu.memory_space<vmem>>, vector<1x128x96xf32>
    %27 = vector.shape_cast %26 : vector<1x128x96xf32> to vector<128x96xf32>
    %cst_21 = arith.constant dense<0.000000e+00> : vector<12x96xf32>
    %28 = tpu.matmul %25, %27, %cst_21 {dimension_numbers = #tpu.dot_dimension_numbers<[1], [0], [0], [1], [0, 0, 1, 1], [], []>} : vector<12x128xf32>, vector<128x96xf32>, vector<12x96xf32> -> vector<12x96xf32>
    %29 = arith.addf %24, %28 : vector<12x96xf32>
    %30 = vector.extract_strided_slice %20 {offsets = [2, 0], sizes = [12, 128], strides = [1, 1]} : vector<14x128xf32> to vector<12x128xf32>
    %c2_22 = arith.constant 2 : index
    %c0_23 = arith.constant 0 : index
    %c0_24 = arith.constant 0 : index
    %31 = vector.load %arg4[%c2_22, %c0_23, %c0_24] : memref<3x128x96xf32, #tpu.memory_space<vmem>>, vector<1x128x96xf32>
    %32 = vector.shape_cast %31 : vector<1x128x96xf32> to vector<128x96xf32>
    %cst_25 = arith.constant dense<0.000000e+00> : vector<12x96xf32>
    %33 = tpu.matmul %30, %32, %cst_25 {dimension_numbers = #tpu.dot_dimension_numbers<[1], [0], [0], [1], [0, 0, 1, 1], [], []>} : vector<12x128xf32>, vector<128x96xf32>, vector<12x96xf32> -> vector<12x96xf32>
    %34 = arith.addf %29, %33 : vector<12x96xf32>
    %c0_26 = arith.constant 0 : index
    %c0_27 = arith.constant 0 : index
    %35 = vector.load %arg6[%c0_26, %c0_27] : memref<1x96xf32, #tpu.memory_space<vmem>>, vector<1x96xf32>
    %36 = vector.broadcast %35 : vector<1x96xf32> to vector<12x96xf32>
    %37 = arith.addf %34, %36 : vector<12x96xf32>
    %38 = vector.extract_strided_slice %20 {offsets = [0, 0], sizes = [12, 128], strides = [1, 1]} : vector<14x128xf32> to vector<12x128xf32>
    %c0_28 = arith.constant 0 : index
    %c0_29 = arith.constant 0 : index
    %c0_30 = arith.constant 0 : index
    %39 = vector.load %arg5[%c0_28, %c0_29, %c0_30] : memref<3x128x96xf32, #tpu.memory_space<vmem>>, vector<1x128x96xf32>
    %40 = vector.shape_cast %39 : vector<1x128x96xf32> to vector<128x96xf32>
    %cst_31 = arith.constant dense<0.000000e+00> : vector<12x96xf32>
    %41 = tpu.matmul %38, %40, %cst_31 {dimension_numbers = #tpu.dot_dimension_numbers<[1], [0], [0], [1], [0, 0, 1, 1], [], []>} : vector<12x128xf32>, vector<128x96xf32>, vector<12x96xf32> -> vector<12x96xf32>
    %42 = vector.extract_strided_slice %20 {offsets = [1, 0], sizes = [12, 128], strides = [1, 1]} : vector<14x128xf32> to vector<12x128xf32>
    %c1_32 = arith.constant 1 : index
    %c0_33 = arith.constant 0 : index
    %c0_34 = arith.constant 0 : index
    %43 = vector.load %arg5[%c1_32, %c0_33, %c0_34] : memref<3x128x96xf32, #tpu.memory_space<vmem>>, vector<1x128x96xf32>
    %44 = vector.shape_cast %43 : vector<1x128x96xf32> to vector<128x96xf32>
    %cst_35 = arith.constant dense<0.000000e+00> : vector<12x96xf32>
    %45 = tpu.matmul %42, %44, %cst_35 {dimension_numbers = #tpu.dot_dimension_numbers<[1], [0], [0], [1], [0, 0, 1, 1], [], []>} : vector<12x128xf32>, vector<128x96xf32>, vector<12x96xf32> -> vector<12x96xf32>
    %46 = arith.addf %41, %45 : vector<12x96xf32>
    %47 = vector.extract_strided_slice %20 {offsets = [2, 0], sizes = [12, 128], strides = [1, 1]} : vector<14x128xf32> to vector<12x128xf32>
    %c2_36 = arith.constant 2 : index
    %c0_37 = arith.constant 0 : index
    %c0_38 = arith.constant 0 : index
    %48 = vector.load %arg5[%c2_36, %c0_37, %c0_38] : memref<3x128x96xf32, #tpu.memory_space<vmem>>, vector<1x128x96xf32>
    %49 = vector.shape_cast %48 : vector<1x128x96xf32> to vector<128x96xf32>
    %cst_39 = arith.constant dense<0.000000e+00> : vector<12x96xf32>
    %50 = tpu.matmul %47, %49, %cst_39 {dimension_numbers = #tpu.dot_dimension_numbers<[1], [0], [0], [1], [0, 0, 1, 1], [], []>} : vector<12x128xf32>, vector<128x96xf32>, vector<12x96xf32> -> vector<12x96xf32>
    %51 = arith.addf %46, %50 : vector<12x96xf32>
    %c0_40 = arith.constant 0 : index
    %c0_41 = arith.constant 0 : index
    %52 = vector.load %arg6[%c0_40, %c0_41] : memref<1x96xf32, #tpu.memory_space<vmem>>, vector<1x96xf32>
    %53 = vector.broadcast %52 : vector<1x96xf32> to vector<12x96xf32>
    %54 = arith.addf %51, %53 : vector<12x96xf32>
    %55 = arith.maximumf %37, %54 : vector<12x96xf32>
    %cst_42 = arith.constant 0.000000e+00 : f32
    %56 = vector.broadcast %cst_42 : f32 to vector<12x96xf32>
    %57 = arith.maximumf %55, %56 : vector<12x96xf32>
    %c0_43 = arith.constant 0 : index
    %c0_44 = arith.constant 0 : index
    %58 = vector.load %arg8[%c0_43, %c0_44] : memref<1x128xf32, #tpu.memory_space<vmem>>, vector<1x128xf32>
    %59 = vector.extract_strided_slice %57 {offsets = [0, 0], sizes = [1, 96], strides = [1, 1]} : vector<12x96xf32> to vector<1x96xf32>
    %60 = vector.extract_strided_slice %57 {offsets = [1, 0], sizes = [1, 96], strides = [1, 1]} : vector<12x96xf32> to vector<1x96xf32>
    %61 = arith.maximumf %59, %60 : vector<1x96xf32>
    %c0_45 = arith.constant 0 : index
    %c0_46 = arith.constant 0 : index
    %62 = vector.load %arg7[%c0_45, %c0_46] : memref<576x128xf32, #tpu.memory_space<vmem>>, vector<96x128xf32>
    %cst_47 = arith.constant dense<0.000000e+00> : vector<1x128xf32>
    %63 = tpu.matmul %61, %62, %cst_47 {dimension_numbers = #tpu.dot_dimension_numbers<[1], [0], [0], [1], [0, 0, 1, 1], [], []>} : vector<1x96xf32>, vector<96x128xf32>, vector<1x128xf32> -> vector<1x128xf32>
    %64 = arith.addf %58, %63 : vector<1x128xf32>
    %65 = vector.extract_strided_slice %57 {offsets = [2, 0], sizes = [1, 96], strides = [1, 1]} : vector<12x96xf32> to vector<1x96xf32>
    %66 = vector.extract_strided_slice %57 {offsets = [3, 0], sizes = [1, 96], strides = [1, 1]} : vector<12x96xf32> to vector<1x96xf32>
    %67 = arith.maximumf %65, %66 : vector<1x96xf32>
    %c96 = arith.constant 96 : index
    %c0_48 = arith.constant 0 : index
    %68 = vector.load %arg7[%c96, %c0_48] : memref<576x128xf32, #tpu.memory_space<vmem>>, vector<96x128xf32>
    %cst_49 = arith.constant dense<0.000000e+00> : vector<1x128xf32>
    %69 = tpu.matmul %67, %68, %cst_49 {dimension_numbers = #tpu.dot_dimension_numbers<[1], [0], [0], [1], [0, 0, 1, 1], [], []>} : vector<1x96xf32>, vector<96x128xf32>, vector<1x128xf32> -> vector<1x128xf32>
    %70 = arith.addf %64, %69 : vector<1x128xf32>
    %71 = vector.extract_strided_slice %57 {offsets = [4, 0], sizes = [1, 96], strides = [1, 1]} : vector<12x96xf32> to vector<1x96xf32>
    %72 = vector.extract_strided_slice %57 {offsets = [5, 0], sizes = [1, 96], strides = [1, 1]} : vector<12x96xf32> to vector<1x96xf32>
    %73 = arith.maximumf %71, %72 : vector<1x96xf32>
    %c192 = arith.constant 192 : index
    %c0_50 = arith.constant 0 : index
    %74 = vector.load %arg7[%c192, %c0_50] : memref<576x128xf32, #tpu.memory_space<vmem>>, vector<96x128xf32>
    %cst_51 = arith.constant dense<0.000000e+00> : vector<1x128xf32>
    %75 = tpu.matmul %73, %74, %cst_51 {dimension_numbers = #tpu.dot_dimension_numbers<[1], [0], [0], [1], [0, 0, 1, 1], [], []>} : vector<1x96xf32>, vector<96x128xf32>, vector<1x128xf32> -> vector<1x128xf32>
    %76 = arith.addf %70, %75 : vector<1x128xf32>
    %77 = vector.extract_strided_slice %57 {offsets = [6, 0], sizes = [1, 96], strides = [1, 1]} : vector<12x96xf32> to vector<1x96xf32>
    %78 = vector.extract_strided_slice %57 {offsets = [7, 0], sizes = [1, 96], strides = [1, 1]} : vector<12x96xf32> to vector<1x96xf32>
    %79 = arith.maximumf %77, %78 : vector<1x96xf32>
    %c288 = arith.constant 288 : index
    %c0_52 = arith.constant 0 : index
    %80 = vector.load %arg7[%c288, %c0_52] : memref<576x128xf32, #tpu.memory_space<vmem>>, vector<96x128xf32>
    %cst_53 = arith.constant dense<0.000000e+00> : vector<1x128xf32>
    %81 = tpu.matmul %79, %80, %cst_53 {dimension_numbers = #tpu.dot_dimension_numbers<[1], [0], [0], [1], [0, 0, 1, 1], [], []>} : vector<1x96xf32>, vector<96x128xf32>, vector<1x128xf32> -> vector<1x128xf32>
    %82 = arith.addf %76, %81 : vector<1x128xf32>
    %83 = vector.extract_strided_slice %57 {offsets = [8, 0], sizes = [1, 96], strides = [1, 1]} : vector<12x96xf32> to vector<1x96xf32>
    %84 = vector.extract_strided_slice %57 {offsets = [9, 0], sizes = [1, 96], strides = [1, 1]} : vector<12x96xf32> to vector<1x96xf32>
    %85 = arith.maximumf %83, %84 : vector<1x96xf32>
    %c384 = arith.constant 384 : index
    %c0_54 = arith.constant 0 : index
    %86 = vector.load %arg7[%c384, %c0_54] : memref<576x128xf32, #tpu.memory_space<vmem>>, vector<96x128xf32>
    %cst_55 = arith.constant dense<0.000000e+00> : vector<1x128xf32>
    %87 = tpu.matmul %85, %86, %cst_55 {dimension_numbers = #tpu.dot_dimension_numbers<[1], [0], [0], [1], [0, 0, 1, 1], [], []>} : vector<1x96xf32>, vector<96x128xf32>, vector<1x128xf32> -> vector<1x128xf32>
    %88 = arith.addf %82, %87 : vector<1x128xf32>
    %89 = vector.extract_strided_slice %57 {offsets = [10, 0], sizes = [1, 96], strides = [1, 1]} : vector<12x96xf32> to vector<1x96xf32>
    %90 = vector.extract_strided_slice %57 {offsets = [11, 0], sizes = [1, 96], strides = [1, 1]} : vector<12x96xf32> to vector<1x96xf32>
    %91 = arith.maximumf %89, %90 : vector<1x96xf32>
    %c480 = arith.constant 480 : index
    %c0_56 = arith.constant 0 : index
    %92 = vector.load %arg7[%c480, %c0_56] : memref<576x128xf32, #tpu.memory_space<vmem>>, vector<96x128xf32>
    %cst_57 = arith.constant dense<0.000000e+00> : vector<1x128xf32>
    %93 = tpu.matmul %91, %92, %cst_57 {dimension_numbers = #tpu.dot_dimension_numbers<[1], [0], [0], [1], [0, 0, 1, 1], [], []>} : vector<1x96xf32>, vector<96x128xf32>, vector<1x128xf32> -> vector<1x128xf32>
    %94 = arith.addf %88, %93 : vector<1x128xf32>
    %cst_58 = arith.constant 0.000000e+00 : f32
    %95 = vector.broadcast %cst_58 : f32 to vector<1x128xf32>
    %96 = arith.maximumf %94, %95 : vector<1x128xf32>
    %c0_59 = arith.constant 0 : index
    %c0_60 = arith.constant 0 : index
    %97 = vector.load %arg9[%c0_59, %c0_60] : memref<128x10xf32, #tpu.memory_space<vmem>>, vector<128x10xf32>
    %cst_61 = arith.constant dense<0.000000e+00> : vector<1x10xf32>
    %98 = tpu.matmul %96, %97, %cst_61 {dimension_numbers = #tpu.dot_dimension_numbers<[1], [0], [0], [1], [0, 0, 1, 1], [], []>} : vector<1x128xf32>, vector<128x10xf32>, vector<1x10xf32> -> vector<1x10xf32>
    %c0_62 = arith.constant 0 : index
    %c0_63 = arith.constant 0 : index
    %99 = vector.load %arg10[%c0_62, %c0_63] : memref<1x10xf32, #tpu.memory_space<vmem>>, vector<1x10xf32>
    %100 = arith.addf %98, %99 : vector<1x10xf32>
    %cst_64 = arith.constant dense<0xFF800000> : vector<1xf32>
    %101 = vector.multi_reduction <maximumf>, %100, %cst_64 [1] : vector<1x10xf32> to vector<1xf32>
    %102 = vector.shape_cast %101 : vector<1xf32> to vector<1x1xf32>
    %103 = vector.broadcast %102 : vector<1x1xf32> to vector<1x10xf32>
    %104 = arith.subf %100, %103 : vector<1x10xf32>
    %105 = math.exp %104 : vector<1x10xf32>
    %cst_65 = arith.constant dense<0.000000e+00> : vector<1xf32>
    %106 = vector.multi_reduction <add>, %105, %cst_65 [1] : vector<1x10xf32> to vector<1xf32>
    %107 = vector.shape_cast %106 : vector<1xf32> to vector<1x1xf32>
    %108 = math.log %107 : vector<1x1xf32>
    %109 = arith.addf %102, %108 : vector<1x1xf32>
    %110 = vector.broadcast %109 : vector<1x1xf32> to vector<1x10xf32>
    %111 = arith.subf %100, %110 : vector<1x10xf32>
    %c0_66 = arith.constant 0 : index
    %c0_67 = arith.constant 0 : index
    %c0_68 = arith.constant 0 : index
    %112 = vector.load %arg11[%c0_66, %c0_67, %c0_68] : memref<1x1x10xf32, #tpu.memory_space<vmem>>, vector<1x1x10xf32>
    %113 = vector.shape_cast %112 : vector<1x1x10xf32> to vector<1x10xf32>
    %114 = vector.shape_cast %111 : vector<1x10xf32> to vector<1x1x10xf32>
    tpu.vector_store %arg11[%c0_66, %c0_67, %c0_68], %114 {strides = array<i32>} : memref<1x1x10xf32, #tpu.memory_space<vmem>>, vector<1x1x10xf32>,
    return
  }
  func.func @transform_0(%arg0: i32) -> (i32, i32, i32) {
    %c0_i32 = arith.constant 0 : i32
    %c0_i32_0 = arith.constant 0 : i32
    %c0_i32_1 = arith.constant 0 : i32
    return %arg0, %c0_i32, %c0_i32_0 : i32, i32, i32
  }
  func.func @transform_1(%arg0: i32) -> (i32, i32, i32) {
    %c0_i32 = arith.constant 0 : i32
    %c0_i32_0 = arith.constant 0 : i32
    %c0_i32_1 = arith.constant 0 : i32
    %c0_i32_2 = arith.constant 0 : i32
    return %c0_i32, %c0_i32_0, %c0_i32_1 : i32, i32, i32
  }
  func.func @transform_2(%arg0: i32) -> (i32, i32) {
    %c0_i32 = arith.constant 0 : i32
    %c0_i32_0 = arith.constant 0 : i32
    %c0_i32_1 = arith.constant 0 : i32
    return %c0_i32, %c0_i32_0 : i32, i32
  }
  func.func @transform_3(%arg0: i32) -> (i32, i32, i32) {
    %c0_i32 = arith.constant 0 : i32
    %c0_i32_0 = arith.constant 0 : i32
    %c0_i32_1 = arith.constant 0 : i32
    %c0_i32_2 = arith.constant 0 : i32
    return %c0_i32, %c0_i32_0, %c0_i32_1 : i32, i32, i32
  }
  func.func @transform_4(%arg0: i32) -> (i32, i32, i32) {
    %c0_i32 = arith.constant 0 : i32
    %c0_i32_0 = arith.constant 0 : i32
    %c0_i32_1 = arith.constant 0 : i32
    %c0_i32_2 = arith.constant 0 : i32
    return %c0_i32, %c0_i32_0, %c0_i32_1 : i32, i32, i32
  }
  func.func @transform_5(%arg0: i32) -> (i32, i32) {
    %c0_i32 = arith.constant 0 : i32
    %c0_i32_0 = arith.constant 0 : i32
    %c0_i32_1 = arith.constant 0 : i32
    return %c0_i32, %c0_i32_0 : i32, i32
  }
  func.func @transform_6(%arg0: i32) -> (i32, i32) {
    %c0_i32 = arith.constant 0 : i32
    %c0_i32_0 = arith.constant 0 : i32
    %c0_i32_1 = arith.constant 0 : i32
    return %c0_i32, %c0_i32_0 : i32, i32
  }
  func.func @transform_7(%arg0: i32) -> (i32, i32) {
    %c0_i32 = arith.constant 0 : i32
    %c0_i32_0 = arith.constant 0 : i32
    %c0_i32_1 = arith.constant 0 : i32
    return %c0_i32, %c0_i32_0 : i32, i32
  }
  func.func @transform_8(%arg0: i32) -> (i32, i32) {
    %c0_i32 = arith.constant 0 : i32
    %c0_i32_0 = arith.constant 0 : i32
    %c0_i32_1 = arith.constant 0 : i32
    return %c0_i32, %c0_i32_0 : i32, i32
  }
  func.func @transform_9(%arg0: i32) -> (i32, i32) {
    %c0_i32 = arith.constant 0 : i32
    %c0_i32_0 = arith.constant 0 : i32
    %c0_i32_1 = arith.constant 0 : i32
    return %c0_i32, %c0_i32_0 : i32, i32
  }
  func.func @transform_10(%arg0: i32) -> (i32, i32, i32) {
    %c0_i32 = arith.constant 0 : i32
    %c0_i32_0 = arith.constant 0 : i32
    %c0_i32_1 = arith.constant 0 : i32
    return %arg0, %c0_i32, %c0_i32_0 : i32, i32, i32
  }
}

</mosaic_0001>

<bundles_post_ra>
// kernel: tile.13
= control target key start
LH: loop header
LB: loop body
LE: loop exit
PB: predicated region body
PF: predicated region fallthrough
CT: control target
= control target key end

     0   :  { %s22_s0 = inlined_call_operand.vmem [shape: f32[16], index: 0, kind: input, shape index: {}]   ;;  %s23_s1 = inlined_call_operand.vmem [shape: f32[8,16], index: 1, kind: output, shape index: {}]  }
   0x1   :  { %v4_v0 = vld [vmem:[%s22_s0] ss:$0 sm:$0xff] }
   0x2   :  { %5 = vst [vmem:[%s23_s1] sm:$0xff] %v4_v0 }

// kernel: tile.14
= control target key start
LH: loop header
LB: loop body
LE: loop exit
PB: predicated region body
PF: predicated region fallthrough
CT: control target
= control target key end

     0   :  { %s67_s10 = smov 112   ;;  %s68_s11 = smov 80   ;;  %vm3_vm0 = vcmask 130048   ;;  %vm9_vm1 = vcmask 1048448   ;;  %vm15_vm2 = vcmask 917248   ;;  %vm21_vm3 = vcmask 786048   ;;  %s111_s0 = inlined_call_operand.vmem [shape: f32[8,16], index: 0, kind: input, shape index: {}]   ;;  %s112_s1 = inlined_call_operand.vmem [shape: f32[1,128], index: 1, kind: output, shape index: {}]  }
   0x1   :  { %v53_v0 = vld [vmem:[%s111_s0 + $0x7] sm:$0x1]   ;;  %v55_v1 = vld [vmem:[%s111_s0 + $0x5] sm:$0x1]   ;;  %v54_v2 = vld [vmem:[%s111_s0 + $0x6] sm:$0x1]  }
   0x2   :  { %7 = vrot.lane.b32.xlu0 %v53_v0, %s67_s10  ;;  %19 = vrot.lane.b32.xlu1 %v55_v1, %s68_s11  ;;  %v56_v3 = vld [vmem:[%s111_s0 + $0x4] sm:$0x1]   ;;  %v2_v4 = vld [vmem:[%s111_s0] sm:$0x1]   ;;  %s69_s18 = smov 96   ;;  %s70_s19 = smov 64  }
   0x3   :  { %4 = vst.msk [vmem:[#allocation0] sm:$0x1] %vm3_vm0, %v2_v4   ;;  %v57_v5 = vld [vmem:[%s111_s0 + $0x3] sm:$0x1]   ;;  %v58_v6 = vld [vmem:[%s111_s0 + $0x2] sm:$0x1]  }
   0x4   :  { %s71_s24 = smov 48   ;;  %s72_s25 = smov 32   ;;  %v59_v7 = vld [vmem:[%s111_s0 + $0x1] sm:$0x1]   ;;  %vm27_vm4 = vcmask 654848   ;;  %vm33_vm5 = vcmask 523648  }
   0x5   :  { %s73_s0 = smov 16   ;;  %vm39_vm6 = vcmask 392448   ;;  %vm45_vm7 = vcmask 261248  }
   0x6   :  { %13 = vrot.lane.b32.xlu0 %v54_v2, %s69_s18  ;;  %25 = vrot.lane.b32.xlu1 %v56_v3, %s70_s19 }
   0xa   :  { %31 = vrot.lane.b32.xlu0 %v57_v5, %s71_s24  ;;  %37 = vrot.lane.b32.xlu1 %v58_v6, %s72_s25 }
   0xe   :  { %43 = vrot.lane.b32.xlu0 %v59_v7, %s73_s0 }
  0x74   :  { %v8_v8 = vpop.permute.xlu0 %7   ;;  %v20_v9 = vpop.permute.xlu1 %19  }
  0x75   :  { %10 = vst.msk [vmem:[#allocation0] sm:$0x1] %vm9_vm1, %v8_v8  }
  0x78   :  { %v14_v10 = vpop.permute.xlu0 %13   ;;  %v26_v11 = vpop.permute.xlu1 %25  }
  0x79   :  { %16 = vst.msk [vmem:[#allocation0] sm:$0x1] %vm15_vm2, %v14_v10  }
  0x7a   :  { %22 = vst.msk [vmem:[#allocation0] sm:$0x1] %vm21_vm3, %v20_v9  }
  0x7b   :  { %28 = vst.msk [vmem:[#allocation0] sm:$0x1] %vm27_vm4, %v26_v11  }
  0x7c   :  { %v32_v12 = vpop.permute.xlu0 %31   ;;  %v38_v13 = vpop.permute.xlu1 %37  }
  0x7d   :  { %34 = vst.msk [vmem:[#allocation0] sm:$0x1] %vm33_vm5, %v32_v12  }
  0x7e   :  { %40 = vst.msk [vmem:[#allocation0] sm:$0x1] %vm39_vm6, %v38_v13  }
  0x80   :  { %v44_v14 = vpop.permute.xlu0 %43  }
  0x81   :  { %46 = vst.msk [vmem:[#allocation0] sm:$0x1] %vm45_vm7, %v44_v14  }
  0x88   :  { %v50_v15 = vld [vmem:[#allocation0] sm:$0x1] }
  0x89   :  { %52 = vst [vmem:[%s112_s1] sm:$0x1] %v50_v15 }

// kernel: tile.18
= control target key start
LH: loop header
LB: loop body
LE: loop exit
PB: predicated region body
PF: predicated region fallthrough
CT: control target
= control target key end

     0   :  { %s22_s0 = inlined_call_operand.vmem [shape: f32[32], index: 0, kind: input, shape index: {}]   ;;  %s23_s1 = inlined_call_operand.vmem [shape: f32[3,32], index: 1, kind: output, shape index: {}]  }
   0x1   :  { %v4_v0 = vld [vmem:[%s22_s0] ss:$0 sm:$0xff] }
   0x2   :  { %5 = vst [vmem:[%s23_s1] sm:$0xf] %v4_v0 }

// kernel: tile.19
= control target key start
LH: loop header
LB: loop body
LE: loop exit
PB: predicated region body
PF: predicated region fallthrough
CT: control target
= control target key end

     0   :  { %vm7_vm0 = vcmask 261120   ;;  %s30_s8 = smov 32   ;;  %vm13_vm1 = vcmask 785920   ;;  %vm19_vm2 = vcmask 523520   ;;  %s47_s0 = inlined_call_operand.vmem [shape: f32[3,32], index: 0, kind: input, shape index: {}]   ;;  %s48_s1 = inlined_call_operand.vmem [shape: f32[1,96], index: 1, kind: output, shape index: {}]  }
   0x1   :  { %v4_v0 = vld [vmem:[%s47_s0] sm:$0xf]  ;;  %s29_s0 = smov 64  }
   0x2   :  { %5 = vst [vmem:[#allocation1] sm:$0xf] %v4_v0 }
   0x9   :  { %v10_v1 = vld [vmem:[#allocation1 + $0x2] sm:$0x1]   ;;  %v6_v2 = vld [vmem:[#allocation1] sm:$0x1]   ;;  %v16_v3 = vld [vmem:[#allocation1 + $0x1] sm:$0x1]  }
   0xa   :  { %11 = vrot.lane.b32.xlu0 %v10_v1, %s29_s0  ;;  %8 = vst.msk [vmem:[#allocation0] sm:$0x1] %vm7_vm0, %v6_v2  }
   0xe   :  { %17 = vrot.lane.b32.xlu0 %v16_v3, %s30_s8 }
  0x7c   :  { %v12_v4 = vpop.permute.xlu0 %11  }
  0x7d   :  { %14 = vst.msk [vmem:[#allocation0] sm:$0x1] %vm13_vm1, %v12_v4  }
  0x80   :  { %v18_v5 = vpop.permute.xlu0 %17  }
  0x81   :  { %20 = vst.msk [vmem:[#allocation0] sm:$0x1] %vm19_vm2, %v18_v5  }
  0x88   :  { %v24_v6 = vld [vmem:[#allocation0] sm:$0x1] }
  0x89   :  { %26 = vst [vmem:[%s48_s1] sm:$0x1] %v24_v6 }

// kernel: cnn2_forward.1
= control target key start
LH: loop header
LB: loop body
LE: loop exit
PB: predicated region body
PF: predicated region fallthrough
CT: control target
= control target key end

     0   :  { %15 = vsyncpa [#allocation3], 0  ;;  %s4005_s0 = inlined_call_operand.vmem [shape: f32[2,16,10], index: 0, kind: input, shape index: {}]   ;;  %s4006_s1 = inlined_call_operand.vmem [shape: f32[3,10,128], index: 1, kind: input, shape index: {}]   ;;  %s4007_s2 = inlined_call_operand.vmem [shape: f32[1,128], index: 2, kind: input, shape index: {}]   ;;  %s4008_s3 = inlined_call_operand.vmem [shape: f32[3,128,96], index: 3, kind: input, shape index: {}]   ;;  %s4009_s4 = inlined_call_operand.vmem [shape: f32[3,128,96], index: 4, kind: input, shape index: {}]   ;;  %s4010_s5 = inlined_call_operand.vmem [shape: f32[1,96], index: 5, kind: input, shape index: {}]   ;;  %s4011_s6 = inlined_call_operand.vmem [shape: f32[576,128], index: 6, kind: input, shape index: {}]   ;;  %s4012_s7 = inlined_call_operand.vmem [shape: f32[1,128], index: 7, kind: input, shape index: {}]   ;;  %s4013_s8 = inlined_call_operand.vmem [shape: f32[128,10], index: 8, kind: input, shape index: {}]   ;;  %s4014_s9 = inlined_call_operand.vmem [shape: f32[1,10], index: 9, kind: input, shape index: {}]   ;;  %s4015_s10 = inlined_call_operand.hbm [shape: f32[2,1,10], index: 10, kind: output, shape index: {}]  }
   0x1   :  { %17 = vsyncpa [#allocation3 + $0x1], 0  ;;  %s3189_s13 = smov 0   ;;  %s3191_s14 = smov 0  }
   0x2   :  { %s3193_s15 = smov 0   ;;  %s3195_s16 = smov 0  }
   0x3 LB: > { %s3210_s17 = sadd.s32 4294967295, %s3127_s16   ;;  %s1916_s18 = sadd.s32 4294967294, %s3127_s16   ;;  %s3127_s16 = sphi %s3195_s16, %s4023_s16   ;;  %s3123_s15 = sphi %s3193_s15, %s4022_s15   ;;  %s3119_s14 = sphi %s3191_s14, %s4021_s14   ;;  %s3115_s13 = sphi %s3189_s13, %s4020_s13  }
   0x4   : > { %s3214_s19 = sadd.s32 1, %s3127_s16   ;;  %s245_s20 = sadd.s32 1, %s3123_s15 }
   0x5   : > { %s242_s21 = ssub.s32 %s3127_s16, %s3214_s19  ;;  %p255_p0 = scmp.ne.s32.totalorder %s3123_s15, %s3119_s14 }
   0x6   : > { %p243_p1 = scmp.eq.s32.totalorder %s242_s21, 0  ;;  %p256_p2 = scmp.eq.s32.totalorder %s3210_s17, 1 }
   0x7   : > { %p261_p3 = scmp.ne.s32.totalorder %s3119_s14, %s3115_s13  ;;  %p262_p4 = scmp.eq.s32.totalorder %s1916_s18, 1 }
   0x8   : > { %s3225_s22 = scalar_select %p243_p1, %s3123_s15, %s245_s20  }
   0x9   : > { %p3227_p5 = por %p256_p2, %p255_p0  ;;  %p3231_p6 = por %p262_p4, %p261_p3 }
   0xa   : > { %p1919_p7 = scmp.ge.s32.totalorder %s3127_s16, 1  ;;  %p315_p8 = scmp.lt.s32.totalorder %s3127_s16, 3 }
   0xc   : > { %p316_p9 = pnand %p1919_p7, %p315_p8 }
   0xd   : > { %v359_v0 = vld [vmem:[%s4006_s1] sm:$0xff] (!%p316_p9)  ;;  %v360_v1 = vld [vmem:[%s4006_s1 + $0x8] sm:$0x3] (!%p316_p9)  ;;  %vm375_vm0 = vcmask (!%p316_p9), 1041408   ;;  %p352_p10 = scmp.lt.s32.totalorder (!%p316_p9), %s3210_s17, 1  ;;  %vm3129_vm1 = vmmov (!%p316_p9), 1  }
   0xe   : > { %319 = sbr.rel (%p316_p9) target bundleno = 1437 (0x59d), region = 60  ;;  %vm3244_vm2 = vmpackc.low (!%p316_p9), %vm375_vm0, %vm3129_vm1  ;;  %v2660_v3 = vpack.c.bf16 (!%p316_p9), %v360_v1, %v359_v0  ;;  %v1930_v4 = vld [vmem:[%s4006_s1 + $0x20] sm:$0xff] (!%p316_p9)  ;;  %v1931_v5 = vld [vmem:[%s4006_s1 + $0x28] sm:$0x3] (!%p316_p9)  ;;  %vm370_vm3 = vcmask (!%p316_p9), 80896   ;;  %vm366_vm4 = vcmask (!%p316_p9), 1046528  }
   0xf   : > { %v2666_v6 = vpack.c.bf16 (!%p316_p9), %v1931_v5, %v1930_v4  ;;  %v1922_v7 = vld [vmem:[%s4006_s1 + $0x10] sm:$0xff] (!%p316_p9)  ;;  %v1923_v8 = vld [vmem:[%s4006_s1 + $0x18] sm:$0x3] (!%p316_p9)  ;;  %v638_v9 = vld [vmem:[%s4008_s3] sm:$0xff] (!%p316_p9)  ;;  %vm539_vm5 = vcmask (!%p316_p9), 1045504   ;;  %vm3131_vm6 = vmmov (!%p316_p9), 0  }
  0x10   : > { %2662 = vmatprep.subr.msk.bf16.mxu0 (!%p316_p9), %vm3244_vm2, %v2660_v3  ;;  %v2654_v10 = vpack.c.bf16 (!%p316_p9), %v1923_v8, %v1922_v7  ;;  %v639_v11 = vld [vmem:[%s4008_s3 + $0x8] sm:$0xff] (!%p316_p9)  ;;  %v1936_v12 = vld [vmem:[%s4008_s3 + $0x80] sm:$0xff] (!%p316_p9)  ;;  %v640_v15 = vld [vmem:[%s4008_s3 + $0x10] sm:$0xff] (!%p316_p9)  ;;  %vm1236_vm7 = vcmask (!%p316_p9), 785408   ;;  %vm1833_vm8 = vcmask (!%p316_p9), 73728   ;;  %s350_s20 = sand.u32 (!%p316_p9), 1, %s3119_s14  }
  0x11   : > { %v1937_v13 = vld [vmem:[%s4008_s3 + $0x88] sm:$0xff] (!%p316_p9)  ;;  %2665 = vmatpush3.bf16.msk.msra.mxu0 (!%p316_p9), %vm3244_vm2, %v2660_v3  ;;  %v2704_v14 = vpack.c.bf16 (!%p316_p9), %v639_v11, %v638_v9  ;;  %v641_v19 = vld [vmem:[%s4008_s3 + $0x18] sm:$0xff] (!%p316_p9)  ;;  %v642_v27 = vld [vmem:[%s4008_s3 + $0x20] sm:$0xff] (!%p316_p9)  ;;  %s2007_s21 = sshll.u32 (!%p316_p9), %s3210_s17, 4  ;;  %s1849_s30 = scalar_lea.sflag (!%p316_p9), [#allocation3], %s350_s20 }
  0x12   : > { %2668 = vmatprep.subr.msk.bf16.mxu0 (!%p316_p9), %vm3244_vm2, %v2666_v6  ;;  %2656 = vmatprep.subr.msk.bf16.mxu1 (!%p316_p9), %vm3244_vm2, %v2654_v10  ;;  %v2672_v18 = vpack.c.bf16 (!%p316_p9), %v1937_v13, %v1936_v12  ;;  %v2708_v26 = vpack.c.bf16 (!%p316_p9), %v641_v19, %v640_v15  ;;  %v643_v28 = vld [vmem:[%s4008_s3 + $0x28] sm:$0xff] (!%p316_p9)  ;;  %v1938_v29 = vld [vmem:[%s4008_s3 + $0x90] sm:$0xff] (!%p316_p9)  ;;  %v1939_v30 = vld [vmem:[%s4008_s3 + $0x98] sm:$0xff] (!%p316_p9)  ;;  %s3962_s29 = scalar_lea.hbm (!%p316_p9), %s4015_s10, %s2007_s21 }
  0x13   : > { %2659 = vmatpush3.bf16.msk.msra.mxu1 (!%p316_p9), %vm3244_vm2, %v2654_v10  ;;  %v2712_v31 = vpack.c.bf16 (!%p316_p9), %v643_v28, %v642_v27  ;;  %v2676_v32 = vpack.c.bf16 (!%p316_p9), %v1939_v30, %v1938_v29  ;;  %v644_v33 = vld [vmem:[%s4008_s3 + $0x30] sm:$0xff] (!%p316_p9)  ;;  %v645_v34 = vld [vmem:[%s4008_s3 + $0x38] sm:$0xff] (!%p316_p9)  ;;  %v1940_v35 = vld [vmem:[%s4008_s3 + $0xa0] sm:$0xff] (!%p316_p9) }
  0x14   : > { %2705 = vmatprep.subr.bf16.mxu1 (!%p316_p9), %v2704_v14  ;;  %v1941_v36 = vld [vmem:[%s4008_s3 + $0xa8] sm:$0xff] (!%p316_p9)  ;;  %v2716_v37 = vpack.c.bf16 (!%p316_p9), %v645_v34, %v644_v33  ;;  %v646_v39 = vld [vmem:[%s4008_s3 + $0x40] sm:$0xff] (!%p316_p9)  ;;  %v1942_v41 = vld [vmem:[%s4008_s3 + $0xb0] sm:$0xff] (!%p316_p9) }
  0x15   : > { %s353_s18 = scalar_select %p352_p10, %s3210_s17, 1  ;;  %v2680_v38 = vpack.c.bf16 %v1941_v36, %v1940_v35  ;;  %v647_v40 = vld [vmem:[%s4008_s3 + $0x48] sm:$0xff]  ;;  %v1943_v42 = vld [vmem:[%s4008_s3 + $0xb8] sm:$0xff]  ;;  %v648_v45 = vld [vmem:[%s4008_s3 + $0x50] sm:$0xff] }
  0x16   : > { %v2720_v43 = vpack.c.bf16 %v647_v40, %v646_v39  ;;  %v2684_v44 = vpack.c.bf16 %v1943_v42, %v1942_v41  ;;  %v649_v46 = vld [vmem:[%s4008_s3 + $0x58] sm:$0xff]  ;;  %v1944_v47 = vld [vmem:[%s4008_s3 + $0xc0] sm:$0xff]  ;;  %v1945_v48 = vld [vmem:[%s4008_s3 + $0xc8] sm:$0xff]  ;;  %s3133_s17 = smov [#allocation2]  }
  0x17   : > { %s2010_s25 = sshll.u32 %s353_s18, 4  ;;  %v2724_v49 = vpack.c.bf16 %v649_v46, %v648_v45  ;;  %v2688_v50 = vpack.c.bf16 %v1945_v48, %v1944_v47  ;;  %v1946_v51 = vld [vmem:[%s4008_s3 + $0xd0] sm:$0xff]  ;;  %v1947_v52 = vld [vmem:[%s4008_s3 + $0xd8] sm:$0xff]  ;;  %v650_v54 = vld [vmem:[%s4008_s3 + $0x60] sm:$0xff]  ;;  %s3069_s11 = sshll.u32 %s3133_s17, 4  ;;  %s3070_s11 = int_to_ptr.vmem [resolvable:$false] %s3069_s11 }
  0x18   : > { %s356_s28 = scalar_lea.vmem %s4005_s0, %s2010_s25  ;;  %v2692_v53 = vpack.c.bf16 %v1947_v52, %v1946_v51  ;;  %v651_v55 = vld [vmem:[%s4008_s3 + $0x68] sm:$0xff]  ;;  %v1948_v57 = vld [vmem:[%s4008_s3 + $0xe0] sm:$0xff]  ;;  %v652_v60 = vld [vmem:[%s4008_s3 + $0x70] sm:$0xff]  ;;  %s351_s25 = scalar_lea.vmem [#allocation2], %s350_s20 }
  0x19   : > { %v357_v16 = vld [vmem:[%s356_s28] sm:$0xff]  ;;  %v358_v17 = vld [vmem:[%s356_s28 + $0x8] sm:$0xff]  ;;  %v2728_v56 = vpack.c.bf16 %v651_v55, %v650_v54  ;;  %v653_v61 = vld [vmem:[%s4008_s3 + $0x78] sm:$0xff]  ;;  %s1861_s26 = sshll.u32 %s351_s25, 4  ;;  %s3071_s12 = scalar_lea.vmem %s3070_s11, 32  ;;  %s3964_s26 = int_to_ptr.vmem [resolvable:$true] %s1861_s26 }
  0x1a   : > { %v367_v20 = vrot.slane %v357_v16, 1  ;;  %2237 = vmatprep.mubr.msk.f32.mxu0 %vm370_vm3, %v357_v16  ;;  %v540_v21 = vrot.slane %v357_v16, 2  ;;  %v541_v22 = vrot.slane %v358_v17, 2  ;;  %v368_v23 = vrot.slane %v358_v17, 1  ;;  %v1949_v58 = vld [vmem:[%s4008_s3 + $0xe8] sm:$0xff]  ;;  %v1950_v63 = vld [vmem:[%s4008_s3 + $0xf0] sm:$0xff]  ;;  %p3072_p0 = scmp.lt.s32.totalorder %s3964_s26, %s3070_s11 }
  0x1b   : > { %2238 = vmatmul.mubr.msk.f32.vlgmr.msra.gmra.mrb[0].mxu0 %vm370_vm3, %v358_v17  ;;  %v2696_v59 = vpack.c.bf16 %v1949_v58, %v1948_v57  ;;  %v2732_v62 = vpack.c.bf16 %v653_v61, %v652_v60  ;;  %v1951_v0 = vld [vmem:[%s4008_s3 + $0xf8] sm:$0xff]  ;;  %v1952_v2 = vld [vmem:[%s4008_s3 + $0x100] sm:$0xff]  ;;  %v1953_v3 = vld [vmem:[%s4008_s3 + $0x108] sm:$0xff]  ;;  %s3065_s18 = scalar_lea.vmem %s3964_s26, 16 }
  0x1c   : > { %2671 = vmatpush3.bf16.msk.msra.mxu0 %vm3244_vm2, %v2666_v6  ;;  %v369_v24 = vsel %vm366_vm4, %v367_v20, %v368_v23  ;;  %v542_v25 = vsel %vm539_vm5, %v540_v21, %v541_v22  ;;  %v2700_v1 = vpack.c.bf16 %v1951_v0, %v1950_v63  ;;  %v2736_v4 = vpack.c.bf16 %v1953_v3, %v1952_v2  ;;  %v1969_v5 = vld [vmem:[%s4009_s4 + $0x80] sm:$0xff]  ;;  %v1970_v6 = vld [vmem:[%s4009_s4 + $0x88] sm:$0xff]  ;;  %v1955_v19 = vld [vmem:[%s4008_s3 + $0x118] sm:$0xff]  ;;  %p3066_p11 = scmp.ne.s32.totalorder %s3964_s26, %s3065_s18  ;;  %p3073_p1 = scmp.lt.s32.totalorder %s3071_s12, %s3065_s18 }
  0x1d   : > { %2230 = vmatprep.mubr.msk.f32.mxu1 %vm370_vm3, %v369_v24  ;;  %2244 = vmatprep.mubr.msk.f32.mxu0 %vm370_vm3, %v542_v25  ;;  %v2768_v7 = vpack.c.bf16 %v1970_v6, %v1969_v5  ;;  %v1935_v11 = vld [vmem:[%s4007_s2] ss:$0 sm:$0xff]  ;;  %v1972_v24 = vld [vmem:[%s4009_s4 + $0x98] sm:$0xff]  ;;  %v1957_v29 = vld [vmem:[%s4008_s3 + $0x128] sm:$0xff] }
  0x1e   : > { %2231 = vmatmul.mubr.msk.f32.vlgmr.msra.gmra.mrb[0].mxu1 %vm370_vm3, %v368_v23  ;;  %2673 = vmatprep.subr.bf16.mxu0 %v2672_v18  ;;  %v1971_v23 = vld [vmem:[%s4009_s4 + $0x90] sm:$0xff]  ;;  %v1956_v28 = vld [vmem:[%s4008_s3 + $0x120] sm:$0xff]  ;;  %v1974_v35 = vld [vmem:[%s4009_s4 + $0xa8] sm:$0xff]  ;;  %p3067_p12 = pnand %p3066_p11, %p3227_p5  ;;  %p3074_p2 = por %p3073_p1, %p3072_p0 }
  0x1f   : > { %2707 = vmatpush3.bf16.msra.mxu1 %v2704_v14  ;;  %v2744_v33 = vpack.c.bf16 %v1957_v29, %v1956_v28  ;;  %v1973_v34 = vld [vmem:[%s4009_s4 + $0xa0] sm:$0xff]  ;;  %v1958_v36 = vld [vmem:[%s4008_s3 + $0x130] sm:$0xff]  ;;  %v1976_v41 = vld [vmem:[%s4009_s4 + $0xb8] sm:$0xff] }
  0x20   : > { %2709 = vmatprep.subr.bf16.mxu1 %v2708_v26  ;;  %v1975_v40 = vld [vmem:[%s4009_s4 + $0xb0] sm:$0xff]  ;;  %v1960_v42 = vld [vmem:[%s4008_s3 + $0x140] sm:$0xff]  ;;  %v1978_v47 = vld [vmem:[%s4009_s4 + $0xc8] sm:$0xff]  ;;  %p3068_p13 = pneg %p3067_p12 }
  0x21   : > { %v1977_v46 = vld [vmem:[%s4009_s4 + $0xc0] sm:$0xff]  ;;  %v1962_v48 = vld [vmem:[%s4008_s3 + $0x150] sm:$0xff]  ;;  %v1965_v55 = vld [vmem:[%s4008_s3 + $0x168] sm:$0xff] }
  0x22   : > { %v1979_v52 = vld [vmem:[%s4009_s4 + $0xd0] sm:$0xff]  ;;  %v1964_v54 = vld [vmem:[%s4008_s3 + $0x160] sm:$0xff]  ;;  %v1967_v61 = vld [vmem:[%s4008_s3 + $0x178] sm:$0xff]  ;;  %p3075_p3 = pnand %p3074_p2, %p3068_p13 }
  0x23   : > { %2245 = vmatmul.mubr.msk.f32.vlgmr.msra.gmra.mrb[0].mxu0 %vm370_vm3, %v541_v22  ;;  %2711 = vmatpush3.bf16.msra.mxu1 %v2708_v26  ;;  %v2760_v57 = vpack.c.bf16 %v1965_v55, %v1964_v54  ;;  %v1981_v58 = vld [vmem:[%s4009_s4 + $0xe0] sm:$0xff]  ;;  %v1966_v60 = vld [vmem:[%s4008_s3 + $0x170] sm:$0xff]  ;;  %v3130_v55 = vmov 0.0|0.0  }
  0x24   : > { %2675 = vmatpush3.bf16.msra.mxu0 %v2672_v18  ;;  %2713 = vmatprep.subr.bf16.mxu1 %v2712_v31  ;;  %v1954_v18 = vld [vmem:[%s4008_s3 + $0x110] sm:$0xff]  ;;  %v2764_v63 = vpack.c.bf16 %v1967_v61, %v1966_v60  ;;  %v936_v3 = vld [vmem:[%s4009_s4] sm:$0xff]  ;;  %v1314_v61 = vld [vmem:[%s4011_s6 + $0x78] sm:$0xff] }
  0x25   : > { %2677 = vmatprep.subr.bf16.mxu0 %v2676_v32  ;;  %v2740_v27 = vpack.c.bf16 %v1955_v19, %v1954_v18  ;;  %v1983_v0 = vld [vmem:[%s4009_s4 + $0xf0] sm:$0xff]  ;;  %v1985_v29 = vld [vmem:[%s4009_s4 + $0x100] sm:$0xff] }
  0x26   : > { %v938_v6 = vld [vmem:[%s4009_s4 + $0x10] sm:$0xff]  ;;  %v1311_v54 = vld [vmem:[%s4011_s6 + $0x60] sm:$0xff] }
  0x27   : > { %2715 = vmatpush3.bf16.msra.mxu1 %v2712_v31  ;;  %v946_v19 = vld [vmem:[%s4009_s4 + $0x50] sm:$0xff] }
  0x28   : > { %2679 = vmatpush3.bf16.msra.mxu0 %v2676_v32  ;;  %2717 = vmatprep.subr.bf16.mxu1 %v2716_v37  ;;  %v2772_v32 = vpack.c.bf16 %v1972_v24, %v1971_v23  ;;  %v948_v23 = vld [vmem:[%s4009_s4 + $0x60] sm:$0xff]  ;;  %v949_v24 = vld [vmem:[%s4009_s4 + $0x68] sm:$0xff]  ;;  %v1313_v60 = vld [vmem:[%s4011_s6 + $0x70] sm:$0xff] }
  0x29   : > { %2681 = vmatprep.subr.bf16.mxu0 %v2680_v38 }
  0x2b   : > { %2719 = vmatpush3.bf16.msra.mxu1 %v2716_v37  ;;  %v1959_v37 = vld [vmem:[%s4008_s3 + $0x138] sm:$0xff] }
  0x2c   : > { %2683 = vmatpush3.bf16.msra.mxu0 %v2680_v38  ;;  %2721 = vmatprep.subr.bf16.mxu1 %v2720_v43  ;;  %v2776_v38 = vpack.c.bf16 %v1974_v35, %v1973_v34  ;;  %v2748_v39 = vpack.c.bf16 %v1959_v37, %v1958_v36  ;;  %v1988_v34 = vld [vmem:[%s4009_s4 + $0x118] sm:$0xff]  ;;  %v1989_v36 = vld [vmem:[%s4009_s4 + $0x120] sm:$0xff]  ;;  %v1990_v37 = vld [vmem:[%s4009_s4 + $0x128] sm:$0xff] }
  0x2d   : > { %2685 = vmatprep.subr.bf16.mxu0 %v2684_v44 }
  0x2f   : > { %2723 = vmatpush3.bf16.msra.mxu1 %v2720_v43  ;;  %v1961_v43 = vld [vmem:[%s4008_s3 + $0x148] sm:$0xff] }
  0x30   : > { %2687 = vmatpush3.bf16.msra.mxu0 %v2684_v44  ;;  %2725 = vmatprep.subr.bf16.mxu1 %v2724_v49  ;;  %v2780_v44 = vpack.c.bf16 %v1976_v41, %v1975_v40  ;;  %v2752_v45 = vpack.c.bf16 %v1961_v43, %v1960_v42  ;;  %v1992_v40 = vld [vmem:[%s4009_s4 + $0x138] sm:$0xff]  ;;  %v1995_v43 = vld [vmem:[%s4009_s4 + $0x150] sm:$0xff] }
  0x31   : > { %2689 = vmatprep.subr.bf16.mxu0 %v2688_v50 }
  0x33   : > { %2727 = vmatpush3.bf16.msra.mxu1 %v2724_v49  ;;  %v1963_v49 = vld [vmem:[%s4008_s3 + $0x158] sm:$0xff] }
  0x34   : > { %2691 = vmatpush3.bf16.msra.mxu0 %v2688_v50  ;;  %2729 = vmatprep.subr.bf16.mxu1 %v2728_v56  ;;  %v2784_v50 = vpack.c.bf16 %v1978_v47, %v1977_v46  ;;  %v2756_v51 = vpack.c.bf16 %v1963_v49, %v1962_v48  ;;  %v1997_v46 = vld [vmem:[%s4009_s4 + $0x160] sm:$0xff]  ;;  %v1998_v47 = vld [vmem:[%s4009_s4 + $0x168] sm:$0xff]  ;;  %v1999_v49 = vld [vmem:[%s4009_s4 + $0x170] sm:$0xff] }
  0x35   : > { %2693 = vmatprep.subr.bf16.mxu0 %v2692_v53  ;;  %v2856_v48 = vpack.c.bf16 %v1998_v47, %v1997_v46 }
  0x37   : > { %2731 = vmatpush3.bf16.msra.mxu1 %v2728_v56 }
  0x38   : > { %2695 = vmatpush3.bf16.msra.mxu0 %v2692_v53  ;;  %2733 = vmatprep.subr.bf16.mxu1 %v2732_v62  ;;  %v1980_v53 = vld [vmem:[%s4009_s4 + $0xd8] sm:$0xff] }
  0x39   : > { %2697 = vmatprep.subr.bf16.mxu0 %v2696_v59  ;;  %v2788_v56 = vpack.c.bf16 %v1980_v53, %v1979_v52  ;;  %v1224_v52 = vld [vmem:[%s4011_s6] sm:$0xff]  ;;  %v1225_v53 = vld [vmem:[%s4011_s6 + $0x8] sm:$0xff] }
  0x3b   : > { %2735 = vmatpush3.bf16.msra.mxu1 %v2732_v62 }
  0x3c   : > { %2699 = vmatpush3.bf16.msra.mxu0 %v2696_v59  ;;  %2737 = vmatprep.subr.bf16.mxu1 %v2736_v4  ;;  %v1982_v59 = vld [vmem:[%s4009_s4 + $0xe8] sm:$0xff] }
  0x3d   : > { %2701 = vmatprep.subr.bf16.mxu0 %v2700_v1  ;;  %v2792_v62 = vpack.c.bf16 %v1982_v59, %v1981_v58  ;;  %v1227_v58 = vld [vmem:[%s4011_s6 + $0x18] sm:$0xff] }
  0x40   : > { %2703 = vmatpush3.bf16.msra.mxu0 %v2700_v1  ;;  %v1984_v1 = vld [vmem:[%s4009_s4 + $0xf8] sm:$0xff] }
  0x41   : > { %2769 = vmatprep.subr.bf16.mxu0 %v2768_v7  ;;  %v2796_v2 = vpack.c.bf16 %v1984_v1, %v1983_v0  ;;  %v1228_v0 = vld [vmem:[%s4011_s6 + $0x20] sm:$0xff]  ;;  %v1229_v1 = vld [vmem:[%s4011_s6 + $0x28] sm:$0xff] }
  0xf1   : > { %v2232_v8 = vpop.f32.mrb[0].mxu1 }
  0xf2   : > { %v445_v9 = vpop.f32.mrb[1].mxu1 }
  0xf6   : > { %v2246_v10 = vpop.f32.mrb[0].mxu0 }
  0xf7   : > { %v2996_v12 = vadd.f32 %v2246_v10, %v2232_v8  ;;  %v616_v13 = vpop.f32.mrb[1].mxu0  ;;  %v941_v10 = vld [vmem:[%s4009_s4 + $0x28] sm:$0xff] }
  0xf8   : > { %v2997_v14 = vadd.f32 %v616_v13, %v445_v9  ;;  %v940_v9 = vld [vmem:[%s4009_s4 + $0x20] sm:$0xff]  ;;  %v943_v13 = vld [vmem:[%s4009_s4 + $0x38] sm:$0xff] }
  0xf9   : > { %v635_v15 = vadd.f32 %v2996_v12, %v1935_v11  ;;  %v942_v12 = vld [vmem:[%s4009_s4 + $0x30] sm:$0xff] }
  0xfa   : > { %v634_v16 = vadd.f32 %v2997_v14, %v1935_v11  ;;  %v2808_v11 = vpack.c.bf16 %v941_v10, %v940_v9  ;;  %v2812_v14 = vpack.c.bf16 %v943_v13, %v942_v12  ;;  %v1317_v9 = vld [vmem:[%s4011_s6 + $0x90] sm:$0xff]  ;;  %v1318_v10 = vld [vmem:[%s4011_s6 + $0x98] sm:$0xff]  ;;  %v1232_v12 = vld [vmem:[%s4011_s6 + $0x40] sm:$0xff] }
  0xfb   : > { %v3395_v17 = vmax.f32 %v635_v15, 0.0  ;;  %v944_v15 = vld [vmem:[%s4009_s4 + $0x40] sm:$0xff]  ;;  %v1233_v13 = vld [vmem:[%s4011_s6 + $0x48] sm:$0xff] }
  0xfc   : > { %v3403_v20 = vmax.f32 %v634_v16, 0.0  ;;  %v945_v16 = vld [vmem:[%s4009_s4 + $0x48] sm:$0xff] }
  0xfd   : > { %v3406_v21 = vrot.slane %v3395_v17, 1  ;;  %v3409_v22 = vrot.slane %v3395_v17, 2  ;;  %v2816_v18 = vpack.c.bf16 %v945_v16, %v944_v15  ;;  %v1319_v15 = vld [vmem:[%s4011_s6 + $0xa0] sm:$0xff]  ;;  %v1320_v16 = vld [vmem:[%s4011_s6 + $0xa8] sm:$0xff] }
  0xfe   : > { %2314 = vmatprep.mubr.f32.mxu1 %v3403_v20  ;;  %v673_v25 = vrot.slane %v3403_v20, 1  ;;  %v845_v26 = vrot.slane %v3403_v20, 2 }
  0xff   : > { %2315 = vmatmul.mubr.f32.vlgmr.msra.gmra.mrb[2].mxu1 %v3395_v17 }
 0x100   : > { %2739 = vmatpush3.bf16.msra.mxu1 %v2736_v4  ;;  %v675_v30 = vsel %vm366_vm4, %v673_v25, %v3406_v21  ;;  %v3431_v31 = vsel %vm539_vm5, %v845_v26, %v3409_v22  ;;  %v937_v4 = vld [vmem:[%s4009_s4 + $0x8] sm:$0xff]  ;;  %v2824_v25 = vpack.c.bf16 %v949_v24, %v948_v23  ;;  %v950_v26 = vld [vmem:[%s4009_s4 + $0x70] sm:$0xff]  ;;  %v1322_v24 = vld [vmem:[%s4011_s6 + $0xb8] sm:$0xff] }
 0x101   : > { %2279 = vmatprep.mubr.f32.mxu0 %v675_v30  ;;  %2349 = vmatprep.mubr.f32.mxu1 %v3431_v31  ;;  %v2800_v5 = vpack.c.bf16 %v937_v4, %v936_v3  ;;  %v1316_v3 = vld [vmem:[%s4011_s6 + $0x88] sm:$0xff]  ;;  %v2871_v4 = vpack.c.bf16 %v1229_v1, %v1228_v0  ;;  %v1321_v23 = vld [vmem:[%s4011_s6 + $0xb0] sm:$0xff] }
 0x102   : > { %2280 = vmatmul.mubr.f32.vlgmr.msra.gmra.mrb[2].mxu0 %v3406_v21  ;;  %2741 = vmatprep.subr.bf16.mxu1 %v2740_v27  ;;  %v1484_v0 = vld [vmem:[%s4011_s6 + $0x128] sm:$0xff] }
 0x103   : > { %2771 = vmatpush3.bf16.msra.mxu0 %v2768_v7  ;;  %2384 = vmatprep.mubr.f32.mxu0 %v675_v30  ;;  %v939_v7 = vld [vmem:[%s4009_s4 + $0x18] sm:$0xff]  ;;  %v1986_v30 = vld [vmem:[%s4009_s4 + $0x108] sm:$0xff] }
 0x104   : > { %2743 = vmatpush3.bf16.msra.mxu1 %v2740_v27  ;;  %2773 = vmatprep.subr.bf16.mxu0 %v2772_v32  ;;  %v2804_v8 = vpack.c.bf16 %v939_v7, %v938_v6  ;;  %v951_v27 = vld [vmem:[%s4009_s4 + $0x78] sm:$0xff]  ;;  %v1230_v6 = vld [vmem:[%s4011_s6 + $0x30] sm:$0xff] }
 0x105   : > { %2745 = vmatprep.subr.bf16.mxu1 %v2744_v33  ;;  %v2828_v28 = vpack.c.bf16 %v951_v27, %v950_v26  ;;  %v1231_v7 = vld [vmem:[%s4011_s6 + $0x38] sm:$0xff]  ;;  %v3132_v26 = vmov 0.0  }
 0x107   : > { %2775 = vmatpush3.bf16.msra.mxu0 %v2772_v32  ;;  %v2832_v32 = vpack.c.bf16 %v1986_v30, %v1985_v29 }
 0x108   : > { %2747 = vmatpush3.bf16.msra.mxu1 %v2744_v33  ;;  %2777 = vmatprep.subr.bf16.mxu0 %v2776_v38  ;;  %v1987_v33 = vld [vmem:[%s4009_s4 + $0x110] sm:$0xff] }
 0x109   : > { %2749 = vmatprep.subr.bf16.mxu1 %v2748_v39  ;;  %v2836_v35 = vpack.c.bf16 %v1988_v34, %v1987_v33  ;;  %v1968_v34 = vld [vmem:[%s4010_s5] ss:$0 sm:$0xff] }
 0x10b   : > { %2779 = vmatpush3.bf16.msra.mxu0 %v2776_v38  ;;  %v2840_v38 = vpack.c.bf16 %v1990_v37, %v1989_v36 }
 0x10c   : > { %2751 = vmatpush3.bf16.msra.mxu1 %v2748_v39  ;;  %2781 = vmatprep.subr.bf16.mxu0 %v2780_v44  ;;  %v1991_v39 = vld [vmem:[%s4009_s4 + $0x130] sm:$0xff] }
 0x10d   : > { %2753 = vmatprep.subr.bf16.mxu1 %v2752_v45  ;;  %v2844_v41 = vpack.c.bf16 %v1992_v40, %v1991_v39 }
 0x10f   : > { %2783 = vmatpush3.bf16.msra.mxu0 %v2780_v44  ;;  %v1996_v44 = vld [vmem:[%s4009_s4 + $0x158] sm:$0xff] }
 0x110   : > { %2755 = vmatpush3.bf16.msra.mxu1 %v2752_v45  ;;  %2785 = vmatprep.subr.bf16.mxu0 %v2784_v50  ;;  %v2852_v45 = vpack.c.bf16 %v1996_v44, %v1995_v43  ;;  %v1397_v43 = vld [vmem:[%s4011_s6 + $0xc0] sm:$0xff]  ;;  %v1398_v44 = vld [vmem:[%s4011_s6 + $0xc8] sm:$0xff] }
 0x111   : > { %2757 = vmatprep.subr.bf16.mxu1 %v2756_v51  ;;  %v2901_v46 = vpack.c.bf16 %v1398_v44, %v1397_v43 }
 0x113   : > { %2787 = vmatpush3.bf16.msra.mxu0 %v2784_v50  ;;  %v2000_v50 = vld [vmem:[%s4009_s4 + $0x178] sm:$0xff] }
 0x114   : > { %2759 = vmatpush3.bf16.msra.mxu1 %v2756_v51  ;;  %2789 = vmatprep.subr.bf16.mxu0 %v2788_v56  ;;  %v2860_v51 = vpack.c.bf16 %v2000_v50, %v1999_v49  ;;  %v1400_v49 = vld [vmem:[%s4011_s6 + $0xd8] sm:$0xff] }
 0x115   : > { %2761 = vmatprep.subr.bf16.mxu1 %v2760_v57 }
 0x117   : > { %2791 = vmatpush3.bf16.msra.mxu0 %v2788_v56  ;;  %v2865_v56 = vpack.c.bf16 %v1225_v53, %v1224_v52  ;;  %v1402_v52 = vld [vmem:[%s4011_s6 + $0xe8] sm:$0xff] }
 0x118   : > { %2763 = vmatpush3.bf16.msra.mxu1 %v2760_v57  ;;  %2793 = vmatprep.subr.bf16.mxu0 %v2792_v62  ;;  %v1226_v57 = vld [vmem:[%s4011_s6 + $0x10] sm:$0xff] }
 0x119   : > { %2765 = vmatprep.subr.bf16.mxu1 %v2764_v63 }
 0x11b   : > { %2795 = vmatpush3.bf16.msra.mxu0 %v2792_v62  ;;  %v2868_v62 = vpack.c.bf16 %v1227_v58, %v1226_v57  ;;  %v1405_v57 = vld [vmem:[%s4011_s6 + $0x100] sm:$0xff]  ;;  %v1406_v58 = vld [vmem:[%s4011_s6 + $0x108] sm:$0xff] }
 0x11c   : > { %2767 = vmatpush3.bf16.msra.mxu1 %v2764_v63  ;;  %2797 = vmatprep.subr.bf16.mxu0 %v2796_v2  ;;  %v2886_v63 = vpack.c.bf16 %v1314_v61, %v1313_v60  ;;  %v1407_v60 = vld [vmem:[%s4011_s6 + $0x110] sm:$0xff]  ;;  %v1408_v61 = vld [vmem:[%s4011_s6 + $0x118] sm:$0xff] }
 0x11d   : > { %2882 = vmatprep.subr.bf16.mxu1 %v3130_v55 }
 0x11f   : > { %2350 = vmatmul.mubr.f32.vlgmr.msra.gmra.mrb[2].mxu1 %v3409_v22  ;;  %2799 = vmatpush3.bf16.msra.mxu0 %v2796_v2  ;;  %v1315_v2 = vld [vmem:[%s4011_s6 + $0x80] sm:$0xff] }
 0x120   : > { %2801 = vmatprep.subr.bf16.mxu0 %v2800_v5  ;;  %2508 = vmatprep.mubr.msk.f32.mxu1 %vm3131_vm6, %v3132_v26 }
 0x122   : > { %2385 = vmatmul.mubr.f32.vlgmr.msra.gmra.mrb[4].mxu0 %v3406_v21 }
 0x123   : > { %2803 = vmatpush3.bf16.msra.mxu0 %v2800_v5  ;;  %2419 = vmatprep.mubr.f32.mxu0 %v3403_v20  ;;  %v947_v20 = vld [vmem:[%s4009_s4 + $0x58] sm:$0xff]  ;;  %v2889_v5 = vpack.c.bf16 %v1316_v3, %v1315_v2  ;;  %v1485_v3 = vld [vmem:[%s4011_s6 + $0x130] sm:$0xff] }
 0x124   : > { %2805 = vmatprep.subr.bf16.mxu0 %v2804_v8  ;;  %v2820_v21 = vpack.c.bf16 %v947_v20, %v946_v19  ;;  %v1234_v19 = vld [vmem:[%s4011_s6 + $0x50] sm:$0xff]  ;;  %v1235_v20 = vld [vmem:[%s4011_s6 + $0x58] sm:$0xff] }
 0x127   : > { %2807 = vmatpush3.bf16.msra.mxu0 %v2804_v8  ;;  %v2874_v8 = vpack.c.bf16 %v1231_v7, %v1230_v6  ;;  %v1487_v6 = vld [vmem:[%s4011_s6 + $0x140] sm:$0xff]  ;;  %v1488_v7 = vld [vmem:[%s4011_s6 + $0x148] sm:$0xff] }
 0x128   : > { %2809 = vmatprep.subr.bf16.mxu0 %v2808_v11 }
 0x12b   : > { %2811 = vmatpush3.bf16.msra.mxu0 %v2808_v11  ;;  %v2892_v11 = vpack.c.bf16 %v1318_v10, %v1317_v9  ;;  %v1489_v9 = vld [vmem:[%s4011_s6 + $0x150] sm:$0xff]  ;;  %v1490_v10 = vld [vmem:[%s4011_s6 + $0x158] sm:$0xff] }
 0x12c   : > { %2813 = vmatprep.subr.bf16.mxu0 %v2812_v14 }
 0x12f   : > { %2815 = vmatpush3.bf16.msra.mxu0 %v2812_v14  ;;  %v2877_v14 = vpack.c.bf16 %v1233_v13, %v1232_v12  ;;  %v1491_v12 = vld [vmem:[%s4011_s6 + $0x160] sm:$0xff]  ;;  %v1492_v13 = vld [vmem:[%s4011_s6 + $0x168] sm:$0xff] }
 0x130   : > { %2817 = vmatprep.subr.bf16.mxu0 %v2816_v18 }
 0x133   : > { %2819 = vmatpush3.bf16.msra.mxu0 %v2816_v18  ;;  %v2895_v18 = vpack.c.bf16 %v1320_v16, %v1319_v15  ;;  %v1493_v15 = vld [vmem:[%s4011_s6 + $0x170] sm:$0xff]  ;;  %v1494_v16 = vld [vmem:[%s4011_s6 + $0x178] sm:$0xff] }
 0x134   : > { %2821 = vmatprep.subr.bf16.mxu0 %v2820_v21 }
 0x137   : > { %2823 = vmatpush3.bf16.msra.mxu0 %v2820_v21  ;;  %v2880_v21 = vpack.c.bf16 %v1235_v20, %v1234_v19  ;;  %v1573_v19 = vld [vmem:[%s4011_s6 + $0x180] sm:$0xff]  ;;  %v1574_v20 = vld [vmem:[%s4011_s6 + $0x188] sm:$0xff] }
 0x138   : > { %2825 = vmatprep.subr.bf16.mxu0 %v2824_v25 }
 0x13b   : > { %2827 = vmatpush3.bf16.msra.mxu0 %v2824_v25  ;;  %v2898_v25 = vpack.c.bf16 %v1322_v24, %v1321_v23  ;;  %v1575_v24 = vld [vmem:[%s4011_s6 + $0x190] sm:$0xff] }
 0x13c   : > { %2829 = vmatprep.subr.bf16.mxu0 %v2828_v28 }
 0x13f   : > { %2831 = vmatpush3.bf16.msra.mxu0 %v2828_v28 }
 0x140   : > { %2833 = vmatprep.subr.bf16.mxu0 %v2832_v32 }
 0x142   : > { %2420 = vmatmul.mubr.f32.vlgmr.msra.gmra.mrb[4].mxu0 %v3395_v17  ;;  %v1993_v17 = vld [vmem:[%s4009_s4 + $0x140] sm:$0xff] }
 0x143   : > { %2835 = vmatpush3.bf16.msra.mxu0 %v2832_v32  ;;  %2454 = vmatprep.mubr.f32.mxu0 %v3431_v31  ;;  %v1994_v31 = vld [vmem:[%s4009_s4 + $0x148] sm:$0xff] }
 0x144   : > { %2837 = vmatprep.subr.bf16.mxu0 %v2836_v35  ;;  %v2848_v42 = vpack.c.bf16 %v1994_v31, %v1993_v17 }
 0x147   : > { %2839 = vmatpush3.bf16.msra.mxu0 %v2836_v35 }
 0x148   : > { %2841 = vmatprep.subr.bf16.mxu0 %v2840_v38 }
 0x14b   : > { %2843 = vmatpush3.bf16.msra.mxu0 %v2840_v38 }
 0x14c   : > { %2845 = vmatprep.subr.bf16.mxu0 %v2844_v41 }
 0x14f   : > { %2847 = vmatpush3.bf16.msra.mxu0 %v2844_v41 }
 0x150   : > { %2849 = vmatprep.subr.bf16.mxu0 %v2848_v42 }
 0x153   : > { %2851 = vmatpush3.bf16.msra.mxu0 %v2848_v42 }
 0x154   : > { %2853 = vmatprep.subr.bf16.mxu0 %v2852_v45 }
 0x157   : > { %2855 = vmatpush3.bf16.msra.mxu0 %v2852_v45 }
 0x158   : > { %2857 = vmatprep.subr.bf16.mxu0 %v2856_v48 }
 0x15b   : > { %2859 = vmatpush3.bf16.msra.mxu0 %v2856_v48  ;;  %v1399_v48 = vld [vmem:[%s4011_s6 + $0xd0] sm:$0xff] }
 0x15c   : > { %2861 = vmatprep.subr.bf16.mxu0 %v2860_v51  ;;  %v2904_v50 = vpack.c.bf16 %v1400_v49, %v1399_v48  ;;  %v1663_v48 = vld [vmem:[%s4011_s6 + $0x200] sm:$0xff]  ;;  %v1664_v49 = vld [vmem:[%s4011_s6 + $0x208] sm:$0xff] }
 0x15f   : > { %2863 = vmatpush3.bf16.msra.mxu0 %v2860_v51  ;;  %v1401_v51 = vld [vmem:[%s4011_s6 + $0xe0] sm:$0xff] }
 0x160   : > { %2864 = vmatprep.subr.bf16.mxu0 %v3130_v55  ;;  %v2907_v53 = vpack.c.bf16 %v1402_v52, %v1401_v51  ;;  %v1665_v51 = vld [vmem:[%s4011_s6 + $0x210] sm:$0xff] }
 0x162   : > { %2455 = vmatmul.mubr.f32.vlgmr.msra.gmra.mrb[4].mxu0 %v3409_v22  ;;  %v1312_v22 = vld [vmem:[%s4011_s6 + $0x68] sm:$0xff] }
 0x163   : > { %v2883_v59 = vpack.c.bf16 %v1312_v22, %v1311_v54  ;;  %2866 = vmatpush3.bf16.msra.mxu0 %v2865_v56  ;;  %2481 = vmatprep.mubr.msk.f32.mxu0 %vm3131_vm6, %v3132_v26  ;;  %v1403_v54 = vld [vmem:[%s4011_s6 + $0xf0] sm:$0xff]  ;;  %v1404_v56 = vld [vmem:[%s4011_s6 + $0xf8] sm:$0xff] }
 0x164   : > { %2867 = vmatprep.subr.bf16.mxu0 %v3130_v55  ;;  %v2910_v22 = vpack.c.bf16 %v1404_v56, %v1403_v54  ;;  %v1668_v54 = vld [vmem:[%s4011_s6 + $0x228] sm:$0xff]  ;;  %v1746_v56 = vld [vmem:[%s4013_s8] sm:$0xff] }
 0x165   : > { %2884 = vmatpush3.bf16.msra.mxu1 %v2883_v59  ;;  %v2913_v59 = vpack.c.bf16 %v1406_v58, %v1405_v57  ;;  %v1748_v57 = vld [vmem:[%s4013_s8 + $0x10] sm:$0xff] }
 0x166   : > { %2885 = vmatprep.subr.bf16.mxu1 %v3130_v55 }
 0x167   : > { %2869 = vmatpush3.bf16.msra.mxu0 %v2868_v62  ;;  %v2916_v62 = vpack.c.bf16 %v1408_v61, %v1407_v60  ;;  %v1669_v61 = vld [vmem:[%s4011_s6 + $0x230] sm:$0xff] }
 0x168   : > { %2870 = vmatprep.subr.bf16.mxu0 %v3130_v55 }
 0x169   : > { %2887 = vmatpush3.bf16.msra.mxu1 %v2886_v63  ;;  %v1483_v63 = vld [vmem:[%s4011_s6 + $0x120] sm:$0xff] }
 0x16a   : > { %2888 = vmatprep.subr.bf16.mxu1 %v3130_v55  ;;  %v2919_v1 = vpack.c.bf16 %v1484_v0, %v1483_v63  ;;  %v1670_v63 = vld [vmem:[%s4011_s6 + $0x238] sm:$0xff]  ;;  %v1750_v0 = vld [vmem:[%s4013_s8 + $0x20] sm:$0xff] }
 0x16b   : > { %2872 = vmatpush3.bf16.msra.mxu0 %v2871_v4  ;;  %v1486_v4 = vld [vmem:[%s4011_s6 + $0x138] sm:$0xff] }
 0x16c   : > { %2873 = vmatprep.subr.bf16.mxu0 %v3130_v55 }
 0x16d   : > { %2890 = vmatpush3.bf16.msra.mxu1 %v2889_v5  ;;  %v2922_v5 = vpack.c.bf16 %v1486_v4, %v1485_v3  ;;  %v1752_v4 = vld [vmem:[%s4013_s8 + $0x30] sm:$0xff] }
 0x16e   : > { %2891 = vmatprep.subr.bf16.mxu1 %v3130_v55 }
 0x16f   : > { %2875 = vmatpush3.bf16.msra.mxu0 %v2874_v8  ;;  %v2925_v8 = vpack.c.bf16 %v1488_v7, %v1487_v6 }
 0x170   : > { %2876 = vmatprep.subr.bf16.mxu0 %v3130_v55 }
 0x171   : > { %2893 = vmatpush3.bf16.msra.mxu1 %v2892_v11  ;;  %v2928_v11 = vpack.c.bf16 %v1490_v10, %v1489_v9  ;;  %v1755_v9 = vld [vmem:[%s4013_s8 + $0x48] sm:$0xff] }
 0x172   : > { %2894 = vmatprep.subr.bf16.mxu1 %v3130_v55 }
 0x173   : > { %2878 = vmatpush3.bf16.msra.mxu0 %v2877_v14  ;;  %v2931_v14 = vpack.c.bf16 %v1492_v13, %v1491_v12  ;;  %v1757_v12 = vld [vmem:[%s4013_s8 + $0x58] sm:$0xff] }
 0x174   : > { %2879 = vmatprep.subr.bf16.mxu0 %v3130_v55 }
 0x175   : > { %2896 = vmatpush3.bf16.msra.mxu1 %v2895_v18  ;;  %v2934_v18 = vpack.c.bf16 %v1494_v16, %v1493_v15  ;;  %v1759_v15 = vld [vmem:[%s4013_s8 + $0x68] sm:$0xff] }
 0x176   : > { %2897 = vmatprep.subr.bf16.mxu1 %v3130_v55 }
 0x177   : > { %2881 = vmatpush3.bf16.msra.mxu0 %v2880_v21  ;;  %v2937_v21 = vpack.c.bf16 %v1574_v20, %v1573_v19  ;;  %v1761_v19 = vld [vmem:[%s4013_s8 + $0x78] sm:$0xff] }
 0x178   : > { %2972 = vmatprep.subr.bf16.mxu0 %v3130_v55 }
 0x179   : > { %2899 = vmatpush3.bf16.msra.mxu1 %v2898_v25  ;;  %v1576_v25 = vld [vmem:[%s4011_s6 + $0x198] sm:$0xff] }
 0x17a   : > { %2900 = vmatprep.subr.bf16.mxu1 %v3130_v55 }
 0x1d5   : > { %v2281_v27 = vpop.f32.mrb[2].mxu0 }
 0x1d6   : > { %v744_v28 = vpop.f32.mrb[3].mxu0 }
 0x1f2   : > { %v2351_v29 = vpop.f32.mrb[2].mxu1 }
 0x1f3   : > { %v2998_v30 = vadd.f32 %v2351_v29, %v2281_v27  ;;  %v916_v32 = vpop.f32.mrb[3].mxu1  ;;  %v2940_v27 = vpack.c.bf16 %v1576_v25, %v1575_v24  ;;  %v1578_v29 = vld [vmem:[%s4011_s6 + $0x1a8] sm:$0xff]  ;;  %v1219_v24 = vld [vmem:[%s4012_s7] sm:$0x1] }
 0x1f4   : > { %v2999_v33 = vadd.f32 %v916_v32, %v744_v28  ;;  %v1577_v28 = vld [vmem:[%s4011_s6 + $0x1a0] sm:$0xff]  ;;  %v1579_v32 = vld [vmem:[%s4011_s6 + $0x1b0] sm:$0xff] }
 0x1f5   : > { %v3696_v36 = vadd.f32 %v2998_v30, %v1968_v34  ;;  %v2943_v30 = vpack.c.bf16 %v1578_v29, %v1577_v28 }
 0x1f6   : > { %v934_v39 = vadd.f32 %v2999_v33, %v1968_v34  ;;  %v1580_v33 = vld [vmem:[%s4011_s6 + $0x1b8] sm:$0xff] }
 0x235   : > { %v2456_v35 = vpop.f32.mrb[4].mxu0 }
 0x236   : > { %v3698_v37 = vadd.f32 %v2456_v35, %v1968_v34  ;;  %v1202_v38 = vpop.f32.mrb[5].mxu0  ;;  %v1581_v35 = vld [vmem:[%s4011_s6 + $0x1c0] sm:$0xff] }
 0x237   : > { %v1213_v40 = vadd.f32 %v1968_v34, %v1202_v38  ;;  %v2946_v34 = vpack.c.bf16 %v1580_v33, %v1579_v32  ;;  %v1582_v38 = vld [vmem:[%s4011_s6 + $0x1c8] sm:$0xff] }
 0x238   : > { %v1216_v41 = vmax.f32 %v3696_v36, %v3698_v37  ;;  %v1659_v36 = vld [vmem:[%s4011_s6 + $0x1e0] sm:$0xff]  ;;  %v1660_v37 = vld [vmem:[%s4011_s6 + $0x1e8] sm:$0xff] }
 0x239   : > { %v1215_v17 = vmax.f32 %v934_v39, %v1213_v40  ;;  %v2949_v39 = vpack.c.bf16 %v1582_v38, %v1581_v35 }
 0x23a   : > { %v1218_v40 = vmax.f32 %v1216_v41, 0.0  ;;  %v2955_v41 = vpack.c.bf16 %v1660_v37, %v1659_v36 }
 0x23b   : > { %v1217_v31 = vmax.f32 %v1215_v17, 0.0  ;;  %v1583_v17 = vld [vmem:[%s4011_s6 + $0x1d0] sm:$0xff] }
 0x23c   : > { %v1570_v43 = vrot.slane %v1218_v40, 1 }
 0x23d   : > { %v1221_v42 = vrot.slane %v1217_v31, 1 }
 0x23e   : > { %v1572_v44 = vmax.f32 %v1218_v40, %v1570_v43 }
 0x23f   : > { %v3708_v45 = vmax.f32 %v1217_v31, %v1221_v42  ;;  %v1584_v31 = vld [vmem:[%s4011_s6 + $0x1d8] sm:$0xff] }
 0x240   : > { %v2952_v42 = vpack.c.bf16 %v1584_v31, %v1583_v17  ;;  %v1671_v7 = vrot.slane %v1572_v44, 2 }
 0x241   : > { %2482 = vmatmul.mubr.msk.f32.vlgmr.msra.gmra.mrb[6].mxu0 %vm1236_vm7, %v3708_v45  ;;  %v1323_v47 = vrot.slane %v3708_v45, 2  ;;  %v1409_v2 = vrot.slane %v3708_v45, 4  ;;  %v1495_v23 = vrot.slane %v3708_v45, 6  ;;  %v1661_v45 = vld [vmem:[%s4011_s6 + $0x1f0] sm:$0xff] }
 0x242   : > { %2651 = vmatprep.mubr.msk.f32.mxu0 %vm3131_vm6, %v3132_v26 }
 0x243   : > { %2509 = vmatmul.mubr.msk.f32.vlgmr.msra.gmra.mrb[4].mxu1 %vm1236_vm7, %v1323_v47 }
 0x244   : > { %2902 = vmatpush3.bf16.msra.mxu1 %v2901_v46  ;;  %2535 = vmatprep.mubr.msk.f32.mxu1 %vm3131_vm6, %v3132_v26  ;;  %v1662_v46 = vld [vmem:[%s4011_s6 + $0x1f8] sm:$0xff] }
 0x245   : > { %2903 = vmatprep.subr.bf16.mxu1 %v3130_v55  ;;  %v2958_v47 = vpack.c.bf16 %v1662_v46, %v1661_v45 }
 0x248   : > { %2905 = vmatpush3.bf16.msra.mxu1 %v2904_v50  ;;  %v2961_v50 = vpack.c.bf16 %v1664_v49, %v1663_v48 }
 0x249   : > { %2906 = vmatprep.subr.bf16.mxu1 %v3130_v55 }
 0x24c   : > { %2908 = vmatpush3.bf16.msra.mxu1 %v2907_v53  ;;  %v1667_v53 = vld [vmem:[%s4011_s6 + $0x220] sm:$0xff] }
 0x24d   : > { %2909 = vmatprep.subr.bf16.mxu1 %v3130_v55  ;;  %v2967_v60 = vpack.c.bf16 %v1668_v54, %v1667_v53 }
 0x250   : > { %2911 = vmatpush3.bf16.msra.mxu1 %v2910_v22  ;;  %v1747_v22 = vld [vmem:[%s4013_s8 + $0x8] sm:$0xff] }
 0x251   : > { %2912 = vmatprep.subr.bf16.mxu1 %v3130_v55  ;;  %v2973_v58 = vpack.c.bf16 %v1747_v22, %v1746_v56 }
 0x253   : > { %2974 = vmatpush3.bf16.msra.mxu0 %v2973_v58 }
 0x254   : > { %2914 = vmatpush3.bf16.msra.mxu1 %v2913_v59  ;;  %v1749_v59 = vld [vmem:[%s4013_s8 + $0x18] sm:$0xff]  ;;  %2975 = vmatprep.subr.bf16.mxu0 %v3130_v55 }
 0x255   : > { %2915 = vmatprep.subr.bf16.mxu1 %v3130_v55 }
 0x258   : > { %2917 = vmatpush3.bf16.msra.mxu1 %v2916_v62  ;;  %v2976_v62 = vpack.c.bf16 %v1749_v59, %v1748_v57 }
 0x259   : > { %2918 = vmatprep.subr.bf16.mxu1 %v3130_v55 }
 0x25a   : > { %2977 = vmatpush3.bf16.msra.mxu0 %v2976_v62 }
 0x25b   : > { %2536 = vmatmul.mubr.msk.f32.vlgmr.msra.gmra.mrb[4].mxu1 %vm1236_vm7, %v1409_v2  ;;  %v2970_v2 = vpack.c.bf16 %v1670_v63, %v1669_v61  ;;  %2978 = vmatprep.subr.bf16.mxu0 %v3130_v55 }
 0x25c   : > { %2920 = vmatpush3.bf16.msra.mxu1 %v2919_v1  ;;  %2562 = vmatprep.mubr.msk.f32.mxu1 %vm3131_vm6, %v3132_v26  ;;  %v1751_v1 = vld [vmem:[%s4013_s8 + $0x28] sm:$0xff] }
 0x25d   : > { %2921 = vmatprep.subr.bf16.mxu1 %v3130_v55  ;;  %v2979_v3 = vpack.c.bf16 %v1751_v1, %v1750_v0 }
 0x25f   : > { %2980 = vmatpush3.bf16.msra.mxu0 %v2979_v3 }
 0x260   : > { %2923 = vmatpush3.bf16.msra.mxu1 %v2922_v5  ;;  %v1753_v5 = vld [vmem:[%s4013_s8 + $0x38] sm:$0xff]  ;;  %2981 = vmatprep.subr.bf16.mxu0 %v3130_v55 }
 0x261   : > { %2924 = vmatprep.subr.bf16.mxu1 %v3130_v55  ;;  %v2982_v6 = vpack.c.bf16 %v1753_v5, %v1752_v4 }
 0x263   : > { %2983 = vmatpush3.bf16.msra.mxu0 %v2982_v6 }
 0x264   : > { %2926 = vmatpush3.bf16.msra.mxu1 %v2925_v8  ;;  %v1754_v8 = vld [vmem:[%s4013_s8 + $0x40] sm:$0xff]  ;;  %2984 = vmatprep.subr.bf16.mxu0 %v3130_v55 }
 0x265   : > { %2927 = vmatprep.subr.bf16.mxu1 %v3130_v55  ;;  %v2985_v10 = vpack.c.bf16 %v1755_v9, %v1754_v8 }
 0x267   : > { %2986 = vmatpush3.bf16.msra.mxu0 %v2985_v10 }
 0x268   : > { %2929 = vmatpush3.bf16.msra.mxu1 %v2928_v11  ;;  %v1756_v11 = vld [vmem:[%s4013_s8 + $0x50] sm:$0xff]  ;;  %2987 = vmatprep.subr.bf16.mxu0 %v3130_v55 }
 0x269   : > { %2930 = vmatprep.subr.bf16.mxu1 %v3130_v55  ;;  %v2988_v13 = vpack.c.bf16 %v1757_v12, %v1756_v11 }
 0x26b   : > { %2989 = vmatpush3.bf16.msra.mxu0 %v2988_v13 }
 0x26c   : > { %2932 = vmatpush3.bf16.msra.mxu1 %v2931_v14  ;;  %v1758_v14 = vld [vmem:[%s4013_s8 + $0x60] sm:$0xff]  ;;  %2990 = vmatprep.subr.bf16.mxu0 %v3130_v55 }
 0x26d   : > { %2933 = vmatprep.subr.bf16.mxu1 %v3130_v55  ;;  %v2991_v16 = vpack.c.bf16 %v1759_v15, %v1758_v14 }
 0x26f   : > { %2992 = vmatpush3.bf16.msra.mxu0 %v2991_v16 }
 0x270   : > { %2935 = vmatpush3.bf16.msra.mxu1 %v2934_v18  ;;  %2993 = vmatprep.subr.bf16.mxu0 %v3130_v55  ;;  %v1760_v18 = vld [vmem:[%s4013_s8 + $0x70] sm:$0xff] }
 0x271   : > { %2936 = vmatprep.subr.bf16.mxu1 %v3130_v55  ;;  %v2994_v20 = vpack.c.bf16 %v1761_v19, %v1760_v18 }
 0x273   : > { %2563 = vmatmul.mubr.msk.f32.vlgmr.msra.gmra.mrb[4].mxu1 %vm1236_vm7, %v1495_v23  ;;  %2995 = vmatpush3.bf16.msra.mxu0 %v2994_v20 }
 0x274   : > { %2938 = vmatpush3.bf16.msra.mxu1 %v2937_v21  ;;  %2589 = vmatprep.mubr.msk.f32.mxu1 %vm3131_vm6, %v3132_v26 }
 0x275   : > { %2939 = vmatprep.subr.bf16.mxu1 %v3130_v55 }
 0x278   : > { %2941 = vmatpush3.bf16.msra.mxu1 %v2940_v27 }
 0x279   : > { %2942 = vmatprep.subr.bf16.mxu1 %v3130_v55 }
 0x27c   : > { %2944 = vmatpush3.bf16.msra.mxu1 %v2943_v30  ;;  %v1762_v30 = vld [vmem:[%s4014_s9] sm:$0x1] }
 0x27d   : > { %2945 = vmatprep.subr.bf16.mxu1 %v3130_v55 }
 0x280   : > { %2947 = vmatpush3.bf16.msra.mxu1 %v2946_v34 }
 0x281   : > { %2948 = vmatprep.subr.bf16.mxu1 %v3130_v55 }
 0x284   : > { %2950 = vmatpush3.bf16.msra.mxu1 %v2949_v39 }
 0x285   : > { %2951 = vmatprep.subr.bf16.mxu1 %v3130_v55 }
 0x288   : > { %2953 = vmatpush3.bf16.msra.mxu1 %v2952_v42 }
 0x289   : > { %2954 = vmatprep.subr.bf16.mxu1 %v3130_v55 }
 0x28b   : > { %2590 = vmatmul.mubr.msk.f32.vlgmr.msra.gmra.mrb[4].mxu1 %vm1236_vm7, %v1572_v44 }
 0x28c   : > { %2956 = vmatpush3.bf16.msra.mxu1 %v2955_v41  ;;  %2616 = vmatprep.mubr.msk.f32.mxu1 %vm3131_vm6, %v3132_v26  ;;  %v1666_v26 = vld [vmem:[%s4011_s6 + $0x218] sm:$0xff] }
 0x28d   : > { %2957 = vmatprep.subr.bf16.mxu1 %v3130_v55  ;;  %v2964_v52 = vpack.c.bf16 %v1666_v26, %v1665_v51 }
 0x290   : > { %2959 = vmatpush3.bf16.msra.mxu1 %v2958_v47 }
 0x291   : > { %2960 = vmatprep.subr.bf16.mxu1 %v3130_v55 }
 0x294   : > { %2962 = vmatpush3.bf16.msra.mxu1 %v2961_v50 }
 0x295   : > { %2963 = vmatprep.subr.bf16.mxu1 %v3130_v55 }
 0x298   : > { %2965 = vmatpush3.bf16.msra.mxu1 %v2964_v52 }
 0x299   : > { %2966 = vmatprep.subr.bf16.mxu1 %v3130_v55 }
 0x29c   : > { %2968 = vmatpush3.bf16.msra.mxu1 %v2967_v60 }
 0x29d   : > { %2969 = vmatprep.subr.bf16.mxu1 %v3130_v55 }
 0x2a0   : > { %2971 = vmatpush3.bf16.msra.mxu1 %v2970_v2 }
 0x2a3   : > { %2617 = vmatmul.mubr.msk.f32.vlgmr.msra.gmra.mrb[4].mxu1 %vm1236_vm7, %v1671_v7 }
 0x314   : > { %v1306_v21 = vpop.f32.mrb[6].mxu0 }
 0x315   : > { %v2483_v23 = vpop.f32.mrb[7].mxu0  ;;  %v1310_v25 = vadd.f32 %v1306_v21, %v1219_v24 }
 0x376   : > { %v1740_v27 = vpop.f32.mrb[4].mxu1 }
 0x377   : > { %v3001_v28 = vadd.f32 %v1740_v27, %v1310_v25  ;;  %v2618_v55 = vpop.f32.mrb[5].mxu1 }
 0x379   : > { %v1745_v29 = vmax.f32 %v3001_v28, 0.0 }
 0x37b   : > { %2652 = vmatmul.mubr.f32.vlgmr.msra.gmra.mrb[8].mxu0 %v1745_v29 }
 0x44e   : > { %v1829_v32 = vpop.f32.mrb[8].mxu0 }
 0x44f   : > { %v1830_v33 = vadd.f32 %v1829_v32, %v1762_v30  ;;  %v2653_v34 = vpop.f32.mrb[9].mxu0 }
 0x451   : > { %v1834_v35 = vsel %vm1833_vm8, %v1830_v33, -inf }
 0x452   : > { %1835 = vmax.xlane.f32.xlu0 %v1834_v35 }
 0x4df   : > { %v1836_v38 = vpop.xlane.xlu0 %1835 }
 0x4e0   : > { %v1837_v39 = vsub.f32 %v1830_v33, %v1836_v38 }
 0x4e2   : > { %v1838_v40 = vmul.f32 1.442695, %v1837_v39 }
 0x4e4   : > { %3061 = vpow2.f32 %v1838_v40 }
 0x4ee   : > { %v3062_v17 = vpop.eup %3061 }
 0x4ef   : > { %v1840_v31 = vsel %vm1833_vm8, %v3062_v17, 0.0 }
 0x4f0   : > { %1841 = vadd.xlane.f32.xlu0 %v1840_v31 }
 0x57d   : > { %v1842_v42 = vpop.xlane.xlu0 %1841 }
 0x57e   : > { %3063 = vlog2.f32 %v1842_v42 }
 0x588   : > { %v3064_v43 = vpop.eup %3063 }
 0x589   : > { %v1844_v36 = vmul.f32 0.6931472, %v3064_v43 }
 0x58b   : > { %v1845_v37 = vadd.f32 %v1844_v36, %v1836_v38 }
 0x58d   : > { %v1846_v41 = vsub.f32 %v1830_v33, %v1845_v37 }
 0x58f   : > { %1847 = vst.msk [vmem:[%s351_s25] sm:$0x1] %vm1833_vm8, %v1846_v41 }
 0x590   : > { %3078 = shalt.err (!%p3075_p3)
}
 0x591   : > { %s3079_s20 = scalar_lea.hbm %s3962_s29, 16  ;;  %s3083_s27 = scalar_lea.hbm %s4015_s10, 32 }
 0x592   : > { %p3080_p4 = scmp.ne.s32.totalorder %s3962_s29, %s3079_s20  ;;  %p3084_p9 = scmp.lt.u32.totalorder %s3962_s29, %s4015_s10 }
 0x593   : > { %p3085_p10 = scmp.lt.u32.totalorder %s3083_s27, %s3079_s20  ;;  %p3087_p12 = scmp.lt.u32.totalorder %s3079_s20, %s3962_s29 }
 0x594   : > { %p3081_p7 = pnand %p3080_p4, %p3227_p5 }
 0x595   : > { %p3086_p11 = por %p3085_p10, %p3084_p9 }
 0x596   : > { %p3082_p8 = pneg %p3081_p7 }
 0x597   : > { %p3088_p13 = por %p3087_p12, %p3086_p11 }
 0x599   : > { %p3089_p0 = pnand %p3088_p13, %p3082_p8 }
 0x59b   : > { %3092 = shalt.err (!%p3089_p0)
}
 0x59c   : > { %3018 = dma.vmem_to_hbm [thread:$0]  (%p3227_p5), %s3964_s26, 16, %s3962_s29, %s1849_s30  }
 0x59d PF: > { %p3024_p1 = scmp.ge.s32.totalorder %s3127_s16, 2  ;;  %s1873_s18 = sand.u32 1, %s3115_s13  }
 0x59e   : > { %s1874_s11 = scalar_lea.sflag [#allocation3], %s1873_s18 }
 0x59f   : > { %p3021_p2 = pnand %p3024_p1, %p3231_p6 }
 0x5a1   : > { %3110 = dma.done.wait (!%p3021_p2), %s1874_s11, 16  }
 0x5a2   : > { %3112 = vsyncadd (!%p3021_p2), %s1874_s11, 4294967280  ;;  %p20_p3 = scmp.ge.s32.totalorder %s3214_s19, 4   ;;  %s4020_s13 = smov %s3119_s14 }
 0x5a3   : > { %s4021_s14 = smov %s3123_s15  ;;  %s4022_s15 = smov %s3225_s22 }
 0x5a4   : > { %s4023_s16 = smov %s3214_s19  ;;  %22 = sbr.rel (!%p20_p3) target bundleno = 3 (0x3), region = 101 }
 0x5ab   :  { %1878 = vsyncpa [#allocation3], 1 }
 0x5ac   :  { %1880 = vsyncpa [#allocation3 + $0x1], 1 }

</bundles_post_ra>
